<compile_context>
chip_gen: v5e
topology: v5e:2x2
jax: 0.10.0
libtpu: 0.0.40
codegen_flags: <defaults>
</compile_context>

<pallas_src>
import math
import functools

import jax
import jax.numpy as jnp
from jax.experimental import pallas as pl
from jax.experimental.pallas import tpu as pltpu


_ARB1 = pltpu.CompilerParams(dimension_semantics=("arbitrary",))
_PAR1 = pltpu.CompilerParams(dimension_semantics=("parallel",))


# ----------------------------------------------------------------------------
# In-kernel helpers
# ----------------------------------------------------------------------------

def _ln_apply(x, a, b, d):
    """Torch LayerNorm-module semantics: alpha*(x-mean)/(std_unbiased+1e-7)+bias."""
    mean = jnp.mean(x, axis=-1, keepdims=True)
    var = jnp.sum((x - mean) ** 2, axis=-1, keepdims=True) / (d - 1)
    std = jnp.sqrt(var)
    return a * (x - mean) / (std + 1e-7) + b


# ----------------------------------------------------------------------------
# Pallas kernels (fused blocks)
# ----------------------------------------------------------------------------

def ln_qkv(x, ln_a, ln_b, wqkv, bqkv):
    """qkv = LN(x) @ [Wq|Wk|Wv] + [bq|bk|bv].  x:(B,S,D) -> (B*S, 3D)."""
    B, S, D = x.shape
    M = B * S
    N3 = wqkv.shape[1]
    x2 = x.reshape(M, D)

    def kernel(x_ref, a_ref, b_ref, w_ref, bw_ref, o_ref):
        xn = _ln_apply(x_ref[...], a_ref[...], b_ref[...], D)
        o_ref[...] = (
            jnp.dot(xn, w_ref[...], preferred_element_type=jnp.float32)
            + bw_ref[...]
        )

    return pl.pallas_call(
        kernel,
        out_shape=jax.ShapeDtypeStruct((M, N3), jnp.float32),
        grid=(1,),
        in_specs=[
            pl.BlockSpec((M, D), lambda i: (0, 0)),
            pl.BlockSpec((1, D), lambda i: (0, 0)),
            pl.BlockSpec((1, D), lambda i: (0, 0)),
            pl.BlockSpec((D, N3), lambda i: (0, 0)),
            pl.BlockSpec((1, N3), lambda i: (0, 0)),
        ],
        out_specs=pl.BlockSpec((M, N3), lambda i: (0, 0)),
        compiler_params=_ARB1,
    )(x2, ln_a.reshape(1, D), ln_b.reshape(1, D), wqkv, bqkv.reshape(1, N3))


def attention_pallas(q, k, v, mask, dh):
    """softmax(q@k^T/sqrt(dh), masked_fill(-1e9)) @ v.

    q: (B,H,Sq,dh), k/v: (B,H,Sk,dh), mask: (B,Sm,Sk) int (Sm in {1,Sq}, 0=masked).
    Grid over batch only; all heads batched per grid step; mask broadcast
    happens inside the kernel (no HBM-materialized broadcast).
    """
    B, H, Sq, _ = q.shape
    Sk = k.shape[2]
    Sm = mask.shape[1]
    scale = 1.0 / math.sqrt(dh)
    mask = mask.astype(jnp.int32)

    def kernel(q_ref, k_ref, v_ref, m_ref, o_ref):
        qb = q_ref[0]              # (H, Sq, dh)
        kb = k_ref[0]              # (H, Sk, dh)
        vb = v_ref[0]              # (H, Sk, dh)
        mb = m_ref[0]              # (Sm, Sk)
        # contract last dims directly (no explicit transpose / XLU traffic)
        s = jnp.einsum("hqd,hkd->hqk", qb, kb,
                       preferred_element_type=jnp.float32) * scale
        s = jnp.where(mb[None, :, :] == 0, -1000000000.0, s)
        s = s - jnp.max(s, axis=-1, keepdims=True)
        e = jnp.exp(s)
        # fully-masked rows degrade to uniform probs, same as torch masked_fill path
        p = e * pl.reciprocal(jnp.sum(e, axis=-1, keepdims=True), approx=True)
        o_ref[0] = jnp.einsum("hqk,hkd->hqd", p, vb,
                              preferred_element_type=jnp.float32)

    return pl.pallas_call(
        kernel,
        out_shape=jax.ShapeDtypeStruct((B, H, Sq, dh), jnp.float32),
        grid=(B,),
        in_specs=[
            pl.BlockSpec((1, H, Sq, dh), lambda b: (b, 0, 0, 0)),
            pl.BlockSpec((1, H, Sk, dh), lambda b: (b, 0, 0, 0)),
            pl.BlockSpec((1, H, Sk, dh), lambda b: (b, 0, 0, 0)),
            pl.BlockSpec((1, Sm, Sk), lambda b: (b, 0, 0)),
        ],
        out_specs=pl.BlockSpec((1, H, Sq, dh), lambda b: (b, 0, 0, 0)),
        compiler_params=_PAR1,
    )(q, k, v, mask)


def post_attn_ffn(attn_c, x, wo, bo, ln_a, ln_b, w1, b1, w2, b2):
    """x' = x + attn_c@Wo+bo ; out = x' + FFN(LN(x')).   One pallas_call."""
    B, S, D = x.shape
    M = B * S
    F = w1.shape[1]

    def kernel(at_ref, x_ref, wo_ref, bo_ref, a_ref, bln_ref,
               w1_ref, b1_ref, w2_ref, b2_ref, o_ref):
        xn = (x_ref[...]
              + jnp.dot(at_ref[...], wo_ref[...],
                        preferred_element_type=jnp.float32)
              + bo_ref[...])
        x1 = _ln_apply(xn, a_ref[...], bln_ref[...], D)
        h = jnp.maximum(
            jnp.dot(x1, w1_ref[...], preferred_element_type=jnp.float32)
            + b1_ref[...], 0.0)
        o_ref[...] = (xn
                      + jnp.dot(h, w2_ref[...],
                                preferred_element_type=jnp.float32)
                      + b2_ref[...])

    out = pl.pallas_call(
        kernel,
        out_shape=jax.ShapeDtypeStruct((M, D), jnp.float32),
        grid=(1,),
        in_specs=[
            pl.BlockSpec((M, D), lambda i: (0, 0)),
            pl.BlockSpec((M, D), lambda i: (0, 0)),
            pl.BlockSpec((D, D), lambda i: (0, 0)),
            pl.BlockSpec((1, D), lambda i: (0, 0)),
            pl.BlockSpec((1, D), lambda i: (0, 0)),
            pl.BlockSpec((1, D), lambda i: (0, 0)),
            pl.BlockSpec((D, F), lambda i: (0, 0)),
            pl.BlockSpec((1, F), lambda i: (0, 0)),
            pl.BlockSpec((F, D), lambda i: (0, 0)),
            pl.BlockSpec((1, D), lambda i: (0, 0)),
        ],
        out_specs=pl.BlockSpec((M, D), lambda i: (0, 0)),
        compiler_params=_ARB1,
    )(attn_c.reshape(M, D), x.reshape(M, D), wo, bo.reshape(1, D),
      ln_a.reshape(1, D), ln_b.reshape(1, D),
      w1, b1.reshape(1, F), w2, b2.reshape(1, D))
    return out.reshape(B, S, D)


def cross_prep(attn_c, x, wo, bo, ln_a, ln_b, wq, bq, e_out, wkv, bkv):
    """Decoder middle block, fused:
         x' = x + attn_c@Wo+bo ; x1 = LN(x')
         q  = x1 @ Wq + bq ; kv = e_out @ [Wk|Wv] + [bk|bv]
       Returns (x' as (B,S,D), q as (B*S,D), kv as (B*Se,2D))."""
    B, S, D = x.shape
    Be, Se, _ = e_out.shape
    M = B * S
    Me = Be * Se
    N2 = wkv.shape[1]

    def kernel(at_ref, x_ref, wo_ref, bo_ref, a_ref, bln_ref,
               wq_ref, bq_ref, e_ref, wkv_ref, bkv_ref,
               xo_ref, q_ref, kv_ref):
        xn = (x_ref[...]
              + jnp.dot(at_ref[...], wo_ref[...],
                        preferred_element_type=jnp.float32)
              + bo_ref[...])
        xo_ref[...] = xn
        x1 = _ln_apply(xn, a_ref[...], bln_ref[...], D)
        q_ref[...] = (jnp.dot(x1, wq_ref[...],
                              preferred_element_type=jnp.float32)
                      + bq_ref[...])
        kv_ref[...] = (jnp.dot(e_ref[...], wkv_ref[...],
                               preferred_element_type=jnp.float32)
                       + bkv_ref[...])

    xo, q, kv = pl.pallas_call(
        kernel,
        out_shape=(jax.ShapeDtypeStruct((M, D), jnp.float32),
                   jax.ShapeDtypeStruct((M, D), jnp.float32),
                   jax.ShapeDtypeStruct((Me, N2), jnp.float32)),
        grid=(1,),
        in_specs=[
            pl.BlockSpec((M, D), lambda i: (0, 0)),
            pl.BlockSpec((M, D), lambda i: (0, 0)),
            pl.BlockSpec((D, D), lambda i: (0, 0)),
            pl.BlockSpec((1, D), lambda i: (0, 0)),
            pl.BlockSpec((1, D), lambda i: (0, 0)),
            pl.BlockSpec((1, D), lambda i: (0, 0)),
            pl.BlockSpec((D, D), lambda i: (0, 0)),
            pl.BlockSpec((1, D), lambda i: (0, 0)),
            pl.BlockSpec((Me, D), lambda i: (0, 0)),
            pl.BlockSpec((D, N2), lambda i: (0, 0)),
            pl.BlockSpec((1, N2), lambda i: (0, 0)),
        ],
        out_specs=[
            pl.BlockSpec((M, D), lambda i: (0, 0)),
            pl.BlockSpec((M, D), lambda i: (0, 0)),
            pl.BlockSpec((Me, N2), lambda i: (0, 0)),
        ],
        compiler_params=_ARB1,
    )(attn_c.reshape(M, D), x.reshape(M, D), wo, bo.reshape(1, D),
      ln_a.reshape(1, D), ln_b.reshape(1, D), wq, bq.reshape(1, D),
      e_out.reshape(Me, D), wkv, bkv.reshape(1, N2))
    return xo.reshape(B, S, D), q, kv


def layer_norm(x, alpha, bias):
    """Standalone LN (encoder final norm). Torch-module semantics."""
    shp = x.shape
    D = shp[-1]
    x2 = x.reshape(-1, D)
    M = x2.shape[0]

    def kernel(x_ref, a_ref, b_ref, o_ref):
        o_ref[...] = _ln_apply(x_ref[...], a_ref[...], b_ref[...], D)

    out = pl.pallas_call(
        kernel,
        out_shape=jax.ShapeDtypeStruct((M, D), jnp.float32),
        grid=(1,),
        in_specs=[
            pl.BlockSpec((M, D), lambda i: (0, 0)),
            pl.BlockSpec((1, D), lambda i: (0, 0)),
            pl.BlockSpec((1, D), lambda i: (0, 0)),
        ],
        out_specs=pl.BlockSpec((M, D), lambda i: (0, 0)),
        compiler_params=_ARB1,
    )(x2, alpha.reshape(1, D), bias.reshape(1, D))
    return out.reshape(shp)


def ln_classifier(x, ln_a, ln_b, w, b):
    """Decoder final LN fused with the classifier linear.
    Output dim padded to a multiple of 128 inside the kernel (lane-dense
    stores), sliced back in JAX."""
    B, S, D = x.shape
    M = B * S
    N = w.shape[1]
    Np = ((N + 127) // 128) * 128
    wp = jnp.pad(w, ((0, 0), (0, Np - N)))
    bp = jnp.pad(b, ((0, Np - N),))

    def kernel(x_ref, a_ref, bln_ref, w_ref, bw_ref, o_ref):
        xn = _ln_apply(x_ref[...], a_ref[...], bln_ref[...], D)
        o_ref[...] = (jnp.dot(xn, w_ref[...],
                              preferred_element_type=jnp.float32)
                      + bw_ref[...])

    out = pl.pallas_call(
        kernel,
        out_shape=jax.ShapeDtypeStruct((M, Np), jnp.float32),
        grid=(1,),
        in_specs=[
            pl.BlockSpec((M, D), lambda i: (0, 0)),
            pl.BlockSpec((1, D), lambda i: (0, 0)),
            pl.BlockSpec((1, D), lambda i: (0, 0)),
            pl.BlockSpec((D, Np), lambda i: (0, 0)),
            pl.BlockSpec((1, Np), lambda i: (0, 0)),
        ],
        out_specs=pl.BlockSpec((M, Np), lambda i: (0, 0)),
        compiler_params=_ARB1,
    )(x.reshape(M, D), ln_a.reshape(1, D), ln_b.reshape(1, D),
      wp, bp.reshape(1, Np))
    return out[:, :N].reshape(B, S, N)


# ----------------------------------------------------------------------------
# Model forward (glue in plain JAX: embedding gather, PE add, head reshapes)
# ----------------------------------------------------------------------------

def encoder_layer_fwd(p, x, mask, n_heads):
    B, S, D = x.shape
    dh = D // n_heads
    qkv = ln_qkv(x, p["ln1"]["a"], p["ln1"]["b"],
                 p["attn"]["qkv_w"], p["attn"]["qkv_b"])
    # exact replication of PyTorch `.view(B, n_heads, -1, dh)` (row-major)
    q = qkv[:, :D].reshape(B, n_heads, -1, dh)
    k = qkv[:, D:2 * D].reshape(B, n_heads, -1, dh)
    v = qkv[:, 2 * D:].reshape(B, n_heads, -1, dh)
    a = attention_pallas(q, k, v, mask, dh).reshape(B, -1, D)
    return post_attn_ffn(a, x, p["attn"]["o_w"], p["attn"]["o_b"],
                         p["ln2"]["a"], p["ln2"]["b"],
                         p["ffn"]["w1"], p["ffn"]["b1"],
                         p["ffn"]["w2"], p["ffn"]["b2"])


def decoder_layer_fwd(p, x, e_out, src_mask, trg_mask, n_heads):
    B, S, D = x.shape
    dh = D // n_heads
    # self-attention
    qkv = ln_qkv(x, p["ln1"]["a"], p["ln1"]["b"],
                 p["attn1"]["qkv_w"], p["attn1"]["qkv_b"])
    q = qkv[:, :D].reshape(B, n_heads, -1, dh)
    k = qkv[:, D:2 * D].reshape(B, n_heads, -1, dh)
    v = qkv[:, 2 * D:].reshape(B, n_heads, -1, dh)
    a1 = attention_pallas(q, k, v, trg_mask, dh).reshape(B, -1, D)
    # out-proj + residual + LN2 + q/k/v projections for cross-attention (fused)
    x, q2f, kv2 = cross_prep(a1, x, p["attn1"]["o_w"], p["attn1"]["o_b"],
                             p["ln2"]["a"], p["ln2"]["b"],
                             p["attn2"]["q_w"], p["attn2"]["q_b"],
                             e_out, p["attn2"]["kv_w"], p["attn2"]["kv_b"])
    q2 = q2f.reshape(B, n_heads, -1, dh)
    k2 = kv2[:, :D].reshape(B, n_heads, -1, dh)
    v2 = kv2[:, D:].reshape(B, n_heads, -1, dh)
    a2 = attention_pallas(q2, k2, v2, src_mask, dh).reshape(B, -1, D)
    # out-proj + residual + LN3 + FFN + residual (fused)
    return post_attn_ffn(a2, x, p["attn2"]["o_w"], p["attn2"]["o_b"],
                         p["ln3"]["a"], p["ln3"]["b"],
                         p["ffn"]["w1"], p["ffn"]["b1"],
                         p["ffn"]["w2"], p["ffn"]["b2"])


def encoder_fwd(p, src, src_mask, n_heads):
    x = p["embed"][src]                          # embedding gather (glue)
    x = x + p["pe"][:, : src.shape[1]]           # positional encoding add
    for layer in p["layers"]:
        x = encoder_layer_fwd(layer, x, src_mask, n_heads)
    return layer_norm(x, p["ln"]["a"], p["ln"]["b"])


def decoder_fwd(p, trg, e_out, src_mask, trg_mask, n_heads):
    x = p["embed"][trg]
    x = x + p["pe"][:, : trg.shape[1]]
    for layer in p["layers"]:
        x = decoder_layer_fwd(layer, x, e_out, src_mask, trg_mask, n_heads)
    return x   # final LN is fused with the classifier head


@functools.partial(jax.jit, static_argnames=("n_heads",))
def punc_transformer_fwd(params, src, trg, trg2, src_mask, trg_mask, trg_mask2,
                         n_heads):
    e_out = encoder_fwd(params["encoder"], src, src_mask, n_heads)
    d1 = decoder_fwd(params["decoder"], trg, e_out, src_mask, trg_mask, n_heads)
    x = ln_classifier(d1, params["decoder"]["ln"]["a"], params["decoder"]["ln"]["b"],
                      params["fc1"]["w"], params["fc1"]["b"])
    d2 = decoder_fwd(params["decoder2"], trg2, e_out, src_mask, trg_mask2, n_heads)
    x2 = ln_classifier(d2, params["decoder2"]["ln"]["a"], params["decoder2"]["ln"]["b"],
                       params["fc2"]["w"], params["fc2"]["b"])
    return x, x2


# ----------------------------------------------------------------------------
# Deterministic parameter construction (synthetic init, no checkpoint load)
# ----------------------------------------------------------------------------

def _uinit(key, shape, fan_in):
    bound = 1.0 / math.sqrt(fan_in)
    return jax.random.uniform(key, shape, jnp.float32, -bound, bound)


def init_linear_p(key, din, dout):
    kw, kb = jax.random.split(key)
    return {"w": _uinit(kw, (din, dout), din), "b": _uinit(kb, (dout,), din)}


def init_ln_p(d):
    return {"a": jnp.ones((d,), jnp.float32), "b": jnp.zeros((d,), jnp.float32)}


def init_self_attn_p(key, d):
    kq, kk, kv, ko = jax.random.split(key, 4)
    q = init_linear_p(kq, d, d); k = init_linear_p(kk, d, d)
    v = init_linear_p(kv, d, d); o = init_linear_p(ko, d, d)
    return {"qkv_w": jnp.concatenate([q["w"], k["w"], v["w"]], axis=1),
            "qkv_b": jnp.concatenate([q["b"], k["b"], v["b"]]),
            "o_w": o["w"], "o_b": o["b"]}


def init_cross_attn_p(key, d):
    kq, kk, kv, ko = jax.random.split(key, 4)
    q = init_linear_p(kq, d, d); k = init_linear_p(kk, d, d)
    v = init_linear_p(kv, d, d); o = init_linear_p(ko, d, d)
    return {"q_w": q["w"], "q_b": q["b"],
            "kv_w": jnp.concatenate([k["w"], v["w"]], axis=1),
            "kv_b": jnp.concatenate([k["b"], v["b"]]),
            "o_w": o["w"], "o_b": o["b"]}


def init_ffn_p(key, d, ff):
    k1, k2 = jax.random.split(key)
    f1 = init_linear_p(k1, d, ff); f2 = init_linear_p(k2, ff, d)
    return {"w1": f1["w"], "b1": f1["b"], "w2": f2["w"], "b2": f2["b"]}


def init_enc_layer_p(key, d, ff):
    ka, kf = jax.random.split(key)
    return {"ln1": init_ln_p(d), "attn": init_self_attn_p(ka, d),
            "ln2": init_ln_p(d), "ffn": init_ffn_p(kf, d, ff)}


def init_dec_layer_p(key, d, ff):
    k1, k2, kf = jax.random.split(key, 3)
    return {"ln1": init_ln_p(d), "attn1": init_self_attn_p(k1, d),
            "ln2": init_ln_p(d), "attn2": init_cross_attn_p(k2, d),
            "ln3": init_ln_p(d), "ffn": init_ffn_p(kf, d, ff)}


def build_pe(d_model, max_len):
    pos = jnp.arange(max_len, dtype=jnp.float32)[:, None]
    i_even = jnp.arange(0, d_model, 2, dtype=jnp.float32)
    inv = 1.0 / jnp.power(10000.0, i_even / d_model)
    pe = jnp.zeros((max_len, d_model), jnp.float32)
    pe = pe.at[:, 0::2].set(jnp.sin(pos * inv))
    pe = pe.at[:, 1::2].set(jnp.cos(pos * inv))   # same exponent i as PyTorch loop
    return pe[None]                               # (1, max_len, d_model)


def init_block_p(key, vocab, d, ff, num, max_len, is_decoder):
    ke, *kls = jax.random.split(key, num + 1)
    layers = [init_dec_layer_p(k, d, ff) if is_decoder else init_enc_layer_p(k, d, ff)
              for k in kls]
    return {"embed": jax.random.normal(ke, (vocab, d), jnp.float32),
            "pe": build_pe(d, max_len), "layers": layers, "ln": init_ln_p(d)}


def init_punc_transformer(key, src_vocab, trg_vocab, trg_vocab2, d_model,
                          ff_dim, num, max_enc, max_dec):
    k1, k2, k3, k4, k5 = jax.random.split(key, 5)
    return {
        "encoder": init_block_p(k1, src_vocab, d_model, ff_dim, num, max_enc, False),
        "decoder": init_block_p(k2, trg_vocab, d_model, ff_dim, num, max_dec, True),
        "decoder2": init_block_p(k3, trg_vocab2, d_model, ff_dim, num, max_dec, True),
        "fc1": init_linear_p(k4, d_model, trg_vocab),
        "fc2": init_linear_p(k5, d_model, trg_vocab2),
    }


def make_trg_mask(trg, pad_idx):
    """Equivalent of create_trg_mask: pad mask & lower-triangular causal mask."""
    pad = (trg != pad_idx)[:, None, :]                       # (B, 1, S)
    S = trg.shape[1]
    causal = jnp.tril(jnp.ones((1, S, S), dtype=bool))       # triu(k=1)==0
    return (pad & causal).astype(jnp.int32)                  # (B, S, S)


# ----------------------------------------------------------------------------
# Main
# ----------------------------------------------------------------------------

if __name__ == "__main__":
    src_vocab, trg_vocab, trg_vocab2 = 50, 40, 12
    d_model, ff_dim, num, n_heads = 32, 64, 2, 4
    max_encoder_len = max_decoder_len = 16
    B, S = 2, 8
    pad_idx = 1        # ignore_idx=1 for trg; idx_mappings['pad'] -> also 1 here

    key = jax.random.PRNGKey(0)
    kp, ks, kt, kt2 = jax.random.split(key, 4)

    params = init_punc_transformer(kp, src_vocab, trg_vocab, trg_vocab2,
                                   d_model, ff_dim, num,
                                   max_encoder_len, max_decoder_len)

    src = jax.random.randint(ks, (B, S), 2, src_vocab)
    trg = jax.random.randint(kt, (B, S), 2, trg_vocab)
    trg2 = jax.random.randint(kt2, (B, S), 2, trg_vocab2)
    # inject some pad tokens so the masks actually mask something
    src = src.at[:, -2:].set(pad_idx)
    trg = trg.at[:, -1:].set(pad_idx)

    src_mask = (src != pad_idx)[:, None, :].astype(jnp.int32)   # (B, 1, S)
    trg_mask = make_trg_mask(trg, pad_idx)                      # (B, S, S)
    trg_mask2 = make_trg_mask(trg2, pad_idx)                    # (B, S, S)

    x, x2 = punc_transformer_fwd(params, src, trg, trg2,
                                 src_mask, trg_mask, trg_mask2, n_heads)
    jax.block_until_ready((x, x2))

    assert x.shape == (B, S, trg_vocab) and x2.shape == (B, S, trg_vocab2)
    assert bool(jnp.all(jnp.isfinite(x))) and bool(jnp.all(jnp.isfinite(x2)))
    # TODO(synk): autoregressive infer=True branch (python-level greedy decode loop
    # with vocab objects) is host-side control flow, not kernel work; not implemented.
    print("KERNEL_OK")
</pallas_src>

<mosaic_0001>
module attributes {stable_mosaic.version = 11 : i64} {
  func.func @kernel(%arg0: i32, %arg1: memref<16x32xf32, #tpu.memory_space<vmem>>, %arg2: memref<1x32xf32, #tpu.memory_space<vmem>>, %arg3: memref<1x32xf32, #tpu.memory_space<vmem>>, %arg4: memref<32x96xf32, #tpu.memory_space<vmem>>, %arg5: memref<1x96xf32, #tpu.memory_space<vmem>>, %arg6: memref<16x96xf32, #tpu.memory_space<vmem>>) attributes {dimension_semantics = [#tpu.dimension_semantics<arbitrary>], iteration_bounds = array<i64: 1>, scalar_prefetch = 0 : i64, scratch_operands = 0 : i64, tpu.core_type = #tpu.core_type<tc>, window_params = [{pipeline_mode = #tpu.pipeline_mode<synchronous>, transform_indices = @transform_0, window_bounds = array<i64: 16, 32>}, {pipeline_mode = #tpu.pipeline_mode<synchronous>, transform_indices = @transform_1, window_bounds = array<i64: 1, 32>}, {pipeline_mode = #tpu.pipeline_mode<synchronous>, transform_indices = @transform_2, window_bounds = array<i64: 1, 32>}, {pipeline_mode = #tpu.pipeline_mode<synchronous>, transform_indices = @transform_3, window_bounds = array<i64: 32, 96>}, {pipeline_mode = #tpu.pipeline_mode<synchronous>, transform_indices = @transform_4, window_bounds = array<i64: 1, 96>}, {pipeline_mode = #tpu.pipeline_mode<synchronous>, transform_indices = @transform_5, window_bounds = array<i64: 16, 96>}]} {
    %c0 = arith.constant 0 : index
    %c0_0 = arith.constant 0 : index
    %0 = vector.load %arg1[%c0, %c0_0] : memref<16x32xf32, #tpu.memory_space<vmem>>, vector<16x32xf32>
    %c0_1 = arith.constant 0 : index
    %c0_2 = arith.constant 0 : index
    %1 = vector.load %arg2[%c0_1, %c0_2] : memref<1x32xf32, #tpu.memory_space<vmem>>, vector<1x32xf32>
    %c0_3 = arith.constant 0 : index
    %c0_4 = arith.constant 0 : index
    %2 = vector.load %arg3[%c0_3, %c0_4] : memref<1x32xf32, #tpu.memory_space<vmem>>, vector<1x32xf32>
    %cst = arith.constant dense<0.000000e+00> : vector<16xf32>
    %3 = vector.multi_reduction <add>, %0, %cst [1] : vector<16x32xf32> to vector<16xf32>
    %4 = vector.shape_cast %3 : vector<16xf32> to vector<16x1xf32>
    %cst_5 = arith.constant 3.200000e+01 : f32
    %5 = vector.broadcast %cst_5 : f32 to vector<16x1xf32>
    %6 = arith.divf %4, %5 : vector<16x1xf32>
    %7 = vector.broadcast %6 : vector<16x1xf32> to vector<16x32xf32>
    %8 = arith.subf %0, %7 : vector<16x32xf32>
    %9 = arith.mulf %8, %8 : vector<16x32xf32>
    %cst_6 = arith.constant dense<0.000000e+00> : vector<16xf32>
    %10 = vector.multi_reduction <add>, %9, %cst_6 [1] : vector<16x32xf32> to vector<16xf32>
    %11 = vector.shape_cast %10 : vector<16xf32> to vector<16x1xf32>
    %cst_7 = arith.constant 3.100000e+01 : f32
    %12 = vector.broadcast %cst_7 : f32 to vector<16x1xf32>
    %13 = arith.divf %11, %12 : vector<16x1xf32>
    %14 = math.sqrt %13 : vector<16x1xf32>
    %15 = vector.broadcast %6 : vector<16x1xf32> to vector<16x32xf32>
    %16 = arith.subf %0, %15 : vector<16x32xf32>
    %17 = vector.broadcast %1 : vector<1x32xf32> to vector<16x32xf32>
    %18 = arith.mulf %17, %16 : vector<16x32xf32>
    %cst_8 = arith.constant 1.000000e-07 : f32
    %19 = vector.broadcast %cst_8 : f32 to vector<16x1xf32>
    %20 = arith.addf %14, %19 : vector<16x1xf32>
    %21 = vector.broadcast %20 : vector<16x1xf32> to vector<16x32xf32>
    %22 = arith.divf %18, %21 : vector<16x32xf32>
    %23 = vector.broadcast %2 : vector<1x32xf32> to vector<16x32xf32>
    %24 = arith.addf %22, %23 : vector<16x32xf32>
    %c0_9 = arith.constant 0 : index
    %c0_10 = arith.constant 0 : index
    %25 = vector.load %arg4[%c0_9, %c0_10] : memref<32x96xf32, #tpu.memory_space<vmem>>, vector<32x96xf32>
    %cst_11 = arith.constant dense<0.000000e+00> : vector<16x96xf32>
    %26 = tpu.matmul %24, %25, %cst_11 {dimension_numbers = #tpu.dot_dimension_numbers<[1], [0], [0], [1], [0, 0, 1, 1], [], []>} : vector<16x32xf32>, vector<32x96xf32>, vector<16x96xf32> -> vector<16x96xf32>
    %c0_12 = arith.constant 0 : index
    %c0_13 = arith.constant 0 : index
    %27 = vector.load %arg5[%c0_12, %c0_13] : memref<1x96xf32, #tpu.memory_space<vmem>>, vector<1x96xf32>
    %28 = vector.broadcast %27 : vector<1x96xf32> to vector<16x96xf32>
    %29 = arith.addf %26, %28 : vector<16x96xf32>
    %c0_14 = arith.constant 0 : index
    %c0_15 = arith.constant 0 : index
    %30 = vector.load %arg6[%c0_14, %c0_15] : memref<16x96xf32, #tpu.memory_space<vmem>>, vector<16x96xf32>
    tpu.vector_store %arg6[%c0_14, %c0_15], %29 {strides = array<i32>} : memref<16x96xf32, #tpu.memory_space<vmem>>, vector<16x96xf32>,
    return
  }
  func.func @transform_0(%arg0: i32) -> (i32, i32) {
    %c0_i32 = arith.constant 0 : i32
    %c0_i32_0 = arith.constant 0 : i32
    %c0_i32_1 = arith.constant 0 : i32
    return %c0_i32, %c0_i32_0 : i32, i32
  }
  func.func @transform_1(%arg0: i32) -> (i32, i32) {
    %c0_i32 = arith.constant 0 : i32
    %c0_i32_0 = arith.constant 0 : i32
    %c0_i32_1 = arith.constant 0 : i32
    return %c0_i32, %c0_i32_0 : i32, i32
  }
  func.func @transform_2(%arg0: i32) -> (i32, i32) {
    %c0_i32 = arith.constant 0 : i32
    %c0_i32_0 = arith.constant 0 : i32
    %c0_i32_1 = arith.constant 0 : i32
    return %c0_i32, %c0_i32_0 : i32, i32
  }
  func.func @transform_3(%arg0: i32) -> (i32, i32) {
    %c0_i32 = arith.constant 0 : i32
    %c0_i32_0 = arith.constant 0 : i32
    %c0_i32_1 = arith.constant 0 : i32
    return %c0_i32, %c0_i32_0 : i32, i32
  }
  func.func @transform_4(%arg0: i32) -> (i32, i32) {
    %c0_i32 = arith.constant 0 : i32
    %c0_i32_0 = arith.constant 0 : i32
    %c0_i32_1 = arith.constant 0 : i32
    return %c0_i32, %c0_i32_0 : i32, i32
  }
  func.func @transform_5(%arg0: i32) -> (i32, i32) {
    %c0_i32 = arith.constant 0 : i32
    %c0_i32_0 = arith.constant 0 : i32
    %c0_i32_1 = arith.constant 0 : i32
    return %c0_i32, %c0_i32_0 : i32, i32
  }
}

module attributes {stable_mosaic.version = 11 : i64} {
  func.func @kernel(%arg0: i32, %arg1: memref<1x4x8x8xf32, #tpu.memory_space<vmem>>, %arg2: memref<1x4x8x8xf32, #tpu.memory_space<vmem>>, %arg3: memref<1x4x8x8xf32, #tpu.memory_space<vmem>>, %arg4: memref<1x1x8xi32, #tpu.memory_space<vmem>>, %arg5: memref<1x4x8x8xf32, #tpu.memory_space<vmem>>) attributes {dimension_semantics = [#tpu.dimension_semantics<parallel>], iteration_bounds = array<i64: 2>, scalar_prefetch = 0 : i64, scratch_operands = 0 : i64, tpu.core_type = #tpu.core_type<tc>, window_params = [{transform_indices = @transform_0, window_bounds = array<i64: 1, 4, 8, 8>}, {transform_indices = @transform_1, window_bounds = array<i64: 1, 4, 8, 8>}, {transform_indices = @transform_2, window_bounds = array<i64: 1, 4, 8, 8>}, {transform_indices = @transform_3, window_bounds = array<i64: 1, 1, 8>}, {transform_indices = @transform_4, window_bounds = array<i64: 1, 4, 8, 8>}]} {
    %c0 = arith.constant 0 : index
    %c0_0 = arith.constant 0 : index
    %c0_1 = arith.constant 0 : index
    %c0_2 = arith.constant 0 : index
    %0 = vector.load %arg1[%c0, %c0_0, %c0_1, %c0_2] : memref<1x4x8x8xf32, #tpu.memory_space<vmem>>, vector<1x4x8x8xf32>
    %1 = vector.shape_cast %0 : vector<1x4x8x8xf32> to vector<4x8x8xf32>
    %c0_3 = arith.constant 0 : index
    %c0_4 = arith.constant 0 : index
    %c0_5 = arith.constant 0 : index
    %c0_6 = arith.constant 0 : index
    %2 = vector.load %arg2[%c0_3, %c0_4, %c0_5, %c0_6] : memref<1x4x8x8xf32, #tpu.memory_space<vmem>>, vector<1x4x8x8xf32>
    %3 = vector.shape_cast %2 : vector<1x4x8x8xf32> to vector<4x8x8xf32>
    %c0_7 = arith.constant 0 : index
    %c0_8 = arith.constant 0 : index
    %c0_9 = arith.constant 0 : index
    %c0_10 = arith.constant 0 : index
    %4 = vector.load %arg3[%c0_7, %c0_8, %c0_9, %c0_10] : memref<1x4x8x8xf32, #tpu.memory_space<vmem>>, vector<1x4x8x8xf32>
    %5 = vector.shape_cast %4 : vector<1x4x8x8xf32> to vector<4x8x8xf32>
    %c0_11 = arith.constant 0 : index
    %c0_12 = arith.constant 0 : index
    %c0_13 = arith.constant 0 : index
    %6 = vector.load %arg4[%c0_11, %c0_12, %c0_13] : memref<1x1x8xi32, #tpu.memory_space<vmem>>, vector<1x1x8xi32>
    %7 = vector.shape_cast %6 : vector<1x1x8xi32> to vector<1x8xi32>
    "tpu.trace_start"() <{level = 10 : i32, message = "hqd,hkd->hqk"}> : () -> ()
    %cst = arith.constant dense<0.000000e+00> : vector<4x8x8xf32>
    %8 = tpu.matmul %1, %3, %cst {dimension_numbers = #tpu.dot_dimension_numbers<[2], [2], [1], [1], [0, 0, 0, 1, 1, 1], [0], [0]>} : vector<4x8x8xf32>, vector<4x8x8xf32>, vector<4x8x8xf32> -> vector<4x8x8xf32>
    "tpu.trace_stop"() : () -> ()
    %cst_14 = arith.constant 0.353553385 : f32
    %9 = vector.broadcast %cst_14 : f32 to vector<4x8x8xf32>
    %10 = arith.mulf %8, %9 : vector<4x8x8xf32>
    %11 = vector.shape_cast %7 : vector<1x8xi32> to vector<1x1x8xi32>
    %c0_i32 = arith.constant 0 : i32
    %12 = vector.broadcast %c0_i32 : i32 to vector<1x1x8xi32>
    %13 = arith.cmpi eq, %11, %12 : vector<1x1x8xi32>
    %cst_15 = arith.constant -1.000000e+09 : f32
    %14 = vector.shape_cast %13 : vector<1x1x8xi1> to vector<1x1x8xi1>
    %15 = vector.broadcast %14 : vector<1x1x8xi1> to vector<4x8x8xi1>
    %16 = vector.broadcast %cst_15 : f32 to vector<4x8x8xf32>
    %17 = arith.select %15, %16, %10 : vector<4x8x8xi1>, vector<4x8x8xf32>
    %cst_16 = arith.constant dense<0xFF800000> : vector<4x8xf32>
    %18 = vector.multi_reduction <maximumf>, %17, %cst_16 [2] : vector<4x8x8xf32> to vector<4x8xf32>
    %19 = vector.shape_cast %18 : vector<4x8xf32> to vector<4x8x1xf32>
    %20 = vector.broadcast %19 : vector<4x8x1xf32> to vector<4x8x8xf32>
    %21 = arith.subf %17, %20 : vector<4x8x8xf32>
    %22 = math.exp %21 : vector<4x8x8xf32>
    %cst_17 = arith.constant dense<0.000000e+00> : vector<4x8xf32>
    %23 = vector.multi_reduction <add>, %22, %cst_17 [2] : vector<4x8x8xf32> to vector<4x8xf32>
    %24 = vector.shape_cast %23 : vector<4x8xf32> to vector<4x8x1xf32>
    %25 = tpu.reciprocal %24 {approx = true} : vector<4x8x1xf32> -> vector<4x8x1xf32>
    %26 = vector.broadcast %25 : vector<4x8x1xf32> to vector<4x8x8xf32>
    %27 = arith.mulf %22, %26 : vector<4x8x8xf32>
    "tpu.trace_start"() <{level = 10 : i32, message = "hqk,hkd->hqd"}> : () -> ()
    %cst_18 = arith.constant dense<0.000000e+00> : vector<4x8x8xf32>
    %28 = tpu.matmul %27, %5, %cst_18 {dimension_numbers = #tpu.dot_dimension_numbers<[2], [1], [1], [2], [0, 0, 0, 1, 1, 2], [0], [0]>} : vector<4x8x8xf32>, vector<4x8x8xf32>, vector<4x8x8xf32> -> vector<4x8x8xf32>
    "tpu.trace_stop"() : () -> ()
    %c0_19 = arith.constant 0 : index
    %c0_20 = arith.constant 0 : index
    %c0_21 = arith.constant 0 : index
    %c0_22 = arith.constant 0 : index
    %29 = vector.load %arg5[%c0_19, %c0_20, %c0_21, %c0_22] : memref<1x4x8x8xf32, #tpu.memory_space<vmem>>, vector<1x4x8x8xf32>
    %30 = vector.shape_cast %29 : vector<1x4x8x8xf32> to vector<4x8x8xf32>
    %31 = vector.shape_cast %28 : vector<4x8x8xf32> to vector<1x4x8x8xf32>
    tpu.vector_store %arg5[%c0_19, %c0_20, %c0_21, %c0_22], %31 {strides = array<i32>} : memref<1x4x8x8xf32, #tpu.memory_space<vmem>>, vector<1x4x8x8xf32>,
    return
  }
  func.func @transform_0(%arg0: i32) -> (i32, i32, i32, i32) {
    %c0_i32 = arith.constant 0 : i32
    %c0_i32_0 = arith.constant 0 : i32
    %c0_i32_1 = arith.constant 0 : i32
    %c0_i32_2 = arith.constant 0 : i32
    return %arg0, %c0_i32, %c0_i32_0, %c0_i32_1 : i32, i32, i32, i32
  }
  func.func @transform_1(%arg0: i32) -> (i32, i32, i32, i32) {
    %c0_i32 = arith.constant 0 : i32
    %c0_i32_0 = arith.constant 0 : i32
    %c0_i32_1 = arith.constant 0 : i32
    %c0_i32_2 = arith.constant 0 : i32
    return %arg0, %c0_i32, %c0_i32_0, %c0_i32_1 : i32, i32, i32, i32
  }
  func.func @transform_2(%arg0: i32) -> (i32, i32, i32, i32) {
    %c0_i32 = arith.constant 0 : i32
    %c0_i32_0 = arith.constant 0 : i32
    %c0_i32_1 = arith.constant 0 : i32
    %c0_i32_2 = arith.constant 0 : i32
    return %arg0, %c0_i32, %c0_i32_0, %c0_i32_1 : i32, i32, i32, i32
  }
  func.func @transform_3(%arg0: i32) -> (i32, i32, i32) {
    %c0_i32 = arith.constant 0 : i32
    %c0_i32_0 = arith.constant 0 : i32
    %c0_i32_1 = arith.constant 0 : i32
    return %arg0, %c0_i32, %c0_i32_0 : i32, i32, i32
  }
  func.func @transform_4(%arg0: i32) -> (i32, i32, i32, i32) {
    %c0_i32 = arith.constant 0 : i32
    %c0_i32_0 = arith.constant 0 : i32
    %c0_i32_1 = arith.constant 0 : i32
    %c0_i32_2 = arith.constant 0 : i32
    return %arg0, %c0_i32, %c0_i32_0, %c0_i32_1 : i32, i32, i32, i32
  }
}

module attributes {stable_mosaic.version = 11 : i64} {
  func.func @kernel(%arg0: i32, %arg1: memref<16x32xf32, #tpu.memory_space<vmem>>, %arg2: memref<1x32xf32, #tpu.memory_space<vmem>>, %arg3: memref<1x32xf32, #tpu.memory_space<vmem>>, %arg4: memref<16x32xf32, #tpu.memory_space<vmem>>) attributes {dimension_semantics = [#tpu.dimension_semantics<arbitrary>], iteration_bounds = array<i64: 1>, scalar_prefetch = 0 : i64, scratch_operands = 0 : i64, tpu.core_type = #tpu.core_type<tc>, window_params = [{pipeline_mode = #tpu.pipeline_mode<synchronous>, transform_indices = @transform_0, window_bounds = array<i64: 16, 32>}, {pipeline_mode = #tpu.pipeline_mode<synchronous>, transform_indices = @transform_1, window_bounds = array<i64: 1, 32>}, {pipeline_mode = #tpu.pipeline_mode<synchronous>, transform_indices = @transform_2, window_bounds = array<i64: 1, 32>}, {pipeline_mode = #tpu.pipeline_mode<synchronous>, transform_indices = @transform_3, window_bounds = array<i64: 16, 32>}]} {
    %c0 = arith.constant 0 : index
    %c0_0 = arith.constant 0 : index
    %0 = vector.load %arg1[%c0, %c0_0] : memref<16x32xf32, #tpu.memory_space<vmem>>, vector<16x32xf32>
    %c0_1 = arith.constant 0 : index
    %c0_2 = arith.constant 0 : index
    %1 = vector.load %arg2[%c0_1, %c0_2] : memref<1x32xf32, #tpu.memory_space<vmem>>, vector<1x32xf32>
    %c0_3 = arith.constant 0 : index
    %c0_4 = arith.constant 0 : index
    %2 = vector.load %arg3[%c0_3, %c0_4] : memref<1x32xf32, #tpu.memory_space<vmem>>, vector<1x32xf32>
    %cst = arith.constant dense<0.000000e+00> : vector<16xf32>
    %3 = vector.multi_reduction <add>, %0, %cst [1] : vector<16x32xf32> to vector<16xf32>
    %4 = vector.shape_cast %3 : vector<16xf32> to vector<16x1xf32>
    %cst_5 = arith.constant 3.200000e+01 : f32
    %5 = vector.broadcast %cst_5 : f32 to vector<16x1xf32>
    %6 = arith.divf %4, %5 : vector<16x1xf32>
    %7 = vector.broadcast %6 : vector<16x1xf32> to vector<16x32xf32>
    %8 = arith.subf %0, %7 : vector<16x32xf32>
    %9 = arith.mulf %8, %8 : vector<16x32xf32>
    %cst_6 = arith.constant dense<0.000000e+00> : vector<16xf32>
    %10 = vector.multi_reduction <add>, %9, %cst_6 [1] : vector<16x32xf32> to vector<16xf32>
    %11 = vector.shape_cast %10 : vector<16xf32> to vector<16x1xf32>
    %cst_7 = arith.constant 3.100000e+01 : f32
    %12 = vector.broadcast %cst_7 : f32 to vector<16x1xf32>
    %13 = arith.divf %11, %12 : vector<16x1xf32>
    %14 = math.sqrt %13 : vector<16x1xf32>
    %15 = vector.broadcast %6 : vector<16x1xf32> to vector<16x32xf32>
    %16 = arith.subf %0, %15 : vector<16x32xf32>
    %17 = vector.broadcast %1 : vector<1x32xf32> to vector<16x32xf32>
    %18 = arith.mulf %17, %16 : vector<16x32xf32>
    %cst_8 = arith.constant 1.000000e-07 : f32
    %19 = vector.broadcast %cst_8 : f32 to vector<16x1xf32>
    %20 = arith.addf %14, %19 : vector<16x1xf32>
    %21 = vector.broadcast %20 : vector<16x1xf32> to vector<16x32xf32>
    %22 = arith.divf %18, %21 : vector<16x32xf32>
    %23 = vector.broadcast %2 : vector<1x32xf32> to vector<16x32xf32>
    %24 = arith.addf %22, %23 : vector<16x32xf32>
    %c0_9 = arith.constant 0 : index
    %c0_10 = arith.constant 0 : index
    %25 = vector.load %arg4[%c0_9, %c0_10] : memref<16x32xf32, #tpu.memory_space<vmem>>, vector<16x32xf32>
    tpu.vector_store %arg4[%c0_9, %c0_10], %24 {strides = array<i32>} : memref<16x32xf32, #tpu.memory_space<vmem>>, vector<16x32xf32>,
    return
  }
  func.func @transform_0(%arg0: i32) -> (i32, i32) {
    %c0_i32 = arith.constant 0 : i32
    %c0_i32_0 = arith.constant 0 : i32
    %c0_i32_1 = arith.constant 0 : i32
    return %c0_i32, %c0_i32_0 : i32, i32
  }
  func.func @transform_1(%arg0: i32) -> (i32, i32) {
    %c0_i32 = arith.constant 0 : i32
    %c0_i32_0 = arith.constant 0 : i32
    %c0_i32_1 = arith.constant 0 : i32
    return %c0_i32, %c0_i32_0 : i32, i32
  }
  func.func @transform_2(%arg0: i32) -> (i32, i32) {
    %c0_i32 = arith.constant 0 : i32
    %c0_i32_0 = arith.constant 0 : i32
    %c0_i32_1 = arith.constant 0 : i32
    return %c0_i32, %c0_i32_0 : i32, i32
  }
  func.func @transform_3(%arg0: i32) -> (i32, i32) {
    %c0_i32 = arith.constant 0 : i32
    %c0_i32_0 = arith.constant 0 : i32
    %c0_i32_1 = arith.constant 0 : i32
    return %c0_i32, %c0_i32_0 : i32, i32
  }
}

module attributes {stable_mosaic.version = 11 : i64} {
  func.func @kernel(%arg0: i32, %arg1: memref<16x32xf32, #tpu.memory_space<vmem>>, %arg2: memref<16x32xf32, #tpu.memory_space<vmem>>, %arg3: memref<32x32xf32, #tpu.memory_space<vmem>>, %arg4: memref<1x32xf32, #tpu.memory_space<vmem>>, %arg5: memref<1x32xf32, #tpu.memory_space<vmem>>, %arg6: memref<1x32xf32, #tpu.memory_space<vmem>>, %arg7: memref<32x64xf32, #tpu.memory_space<vmem>>, %arg8: memref<1x64xf32, #tpu.memory_space<vmem>>, %arg9: memref<64x32xf32, #tpu.memory_space<vmem>>, %arg10: memref<1x32xf32, #tpu.memory_space<vmem>>, %arg11: memref<16x32xf32, #tpu.memory_space<vmem>>) attributes {dimension_semantics = [#tpu.dimension_semantics<arbitrary>], iteration_bounds = array<i64: 1>, scalar_prefetch = 0 : i64, scratch_operands = 0 : i64, tpu.core_type = #tpu.core_type<tc>, window_params = [{pipeline_mode = #tpu.pipeline_mode<synchronous>, transform_indices = @transform_0, window_bounds = array<i64: 16, 32>}, {pipeline_mode = #tpu.pipeline_mode<synchronous>, transform_indices = @transform_1, window_bounds = array<i64: 16, 32>}, {pipeline_mode = #tpu.pipeline_mode<synchronous>, transform_indices = @transform_2, window_bounds = array<i64: 32, 32>}, {pipeline_mode = #tpu.pipeline_mode<synchronous>, transform_indices = @transform_3, window_bounds = array<i64: 1, 32>}, {pipeline_mode = #tpu.pipeline_mode<synchronous>, transform_indices = @transform_4, window_bounds = array<i64: 1, 32>}, {pipeline_mode = #tpu.pipeline_mode<synchronous>, transform_indices = @transform_5, window_bounds = array<i64: 1, 32>}, {pipeline_mode = #tpu.pipeline_mode<synchronous>, transform_indices = @transform_6, window_bounds = array<i64: 32, 64>}, {pipeline_mode = #tpu.pipeline_mode<synchronous>, transform_indices = @transform_7, window_bounds = array<i64: 1, 64>}, {pipeline_mode = #tpu.pipeline_mode<synchronous>, transform_indices = @transform_8, window_bounds = array<i64: 64, 32>}, {pipeline_mode = #tpu.pipeline_mode<synchronous>, transform_indices = @transform_9, window_bounds = array<i64: 1, 32>}, {pipeline_mode = #tpu.pipeline_mode<synchronous>, transform_indices = @transform_10, window_bounds = array<i64: 16, 32>}]} {
    %c0 = arith.constant 0 : index
    %c0_0 = arith.constant 0 : index
    %0 = vector.load %arg2[%c0, %c0_0] : memref<16x32xf32, #tpu.memory_space<vmem>>, vector<16x32xf32>
    %c0_1 = arith.constant 0 : index
    %c0_2 = arith.constant 0 : index
    %1 = vector.load %arg1[%c0_1, %c0_2] : memref<16x32xf32, #tpu.memory_space<vmem>>, vector<16x32xf32>
    %c0_3 = arith.constant 0 : index
    %c0_4 = arith.constant 0 : index
    %2 = vector.load %arg3[%c0_3, %c0_4] : memref<32x32xf32, #tpu.memory_space<vmem>>, vector<32x32xf32>
    %cst = arith.constant dense<0.000000e+00> : vector<16x32xf32>
    %3 = tpu.matmul %1, %2, %cst {dimension_numbers = #tpu.dot_dimension_numbers<[1], [0], [0], [1], [0, 0, 1, 1], [], []>} : vector<16x32xf32>, vector<32x32xf32>, vector<16x32xf32> -> vector<16x32xf32>
    %4 = arith.addf %0, %3 : vector<16x32xf32>
    %c0_5 = arith.constant 0 : index
    %c0_6 = arith.constant 0 : index
    %5 = vector.load %arg4[%c0_5, %c0_6] : memref<1x32xf32, #tpu.memory_space<vmem>>, vector<1x32xf32>
    %6 = vector.broadcast %5 : vector<1x32xf32> to vector<16x32xf32>
    %7 = arith.addf %4, %6 : vector<16x32xf32>
    %c0_7 = arith.constant 0 : index
    %c0_8 = arith.constant 0 : index
    %8 = vector.load %arg5[%c0_7, %c0_8] : memref<1x32xf32, #tpu.memory_space<vmem>>, vector<1x32xf32>
    %c0_9 = arith.constant 0 : index
    %c0_10 = arith.constant 0 : index
    %9 = vector.load %arg6[%c0_9, %c0_10] : memref<1x32xf32, #tpu.memory_space<vmem>>, vector<1x32xf32>
    %cst_11 = arith.constant dense<0.000000e+00> : vector<16xf32>
    %10 = vector.multi_reduction <add>, %7, %cst_11 [1] : vector<16x32xf32> to vector<16xf32>
    %11 = vector.shape_cast %10 : vector<16xf32> to vector<16x1xf32>
    %cst_12 = arith.constant 3.200000e+01 : f32
    %12 = vector.broadcast %cst_12 : f32 to vector<16x1xf32>
    %13 = arith.divf %11, %12 : vector<16x1xf32>
    %14 = vector.broadcast %13 : vector<16x1xf32> to vector<16x32xf32>
    %15 = arith.subf %7, %14 : vector<16x32xf32>
    %16 = arith.mulf %15, %15 : vector<16x32xf32>
    %cst_13 = arith.constant dense<0.000000e+00> : vector<16xf32>
    %17 = vector.multi_reduction <add>, %16, %cst_13 [1] : vector<16x32xf32> to vector<16xf32>
    %18 = vector.shape_cast %17 : vector<16xf32> to vector<16x1xf32>
    %cst_14 = arith.constant 3.100000e+01 : f32
    %19 = vector.broadcast %cst_14 : f32 to vector<16x1xf32>
    %20 = arith.divf %18, %19 : vector<16x1xf32>
    %21 = math.sqrt %20 : vector<16x1xf32>
    %22 = vector.broadcast %13 : vector<16x1xf32> to vector<16x32xf32>
    %23 = arith.subf %7, %22 : vector<16x32xf32>
    %24 = vector.broadcast %8 : vector<1x32xf32> to vector<16x32xf32>
    %25 = arith.mulf %24, %23 : vector<16x32xf32>
    %cst_15 = arith.constant 1.000000e-07 : f32
    %26 = vector.broadcast %cst_15 : f32 to vector<16x1xf32>
    %27 = arith.addf %21, %26 : vector<16x1xf32>
    %28 = vector.broadcast %27 : vector<16x1xf32> to vector<16x32xf32>
    %29 = arith.divf %25, %28 : vector<16x32xf32>
    %30 = vector.broadcast %9 : vector<1x32xf32> to vector<16x32xf32>
    %31 = arith.addf %29, %30 : vector<16x32xf32>
    %c0_16 = arith.constant 0 : index
    %c0_17 = arith.constant 0 : index
    %32 = vector.load %arg7[%c0_16, %c0_17] : memref<32x64xf32, #tpu.memory_space<vmem>>, vector<32x64xf32>
    %cst_18 = arith.constant dense<0.000000e+00> : vector<16x64xf32>
    %33 = tpu.matmul %31, %32, %cst_18 {dimension_numbers = #tpu.dot_dimension_numbers<[1], [0], [0], [1], [0, 0, 1, 1], [], []>} : vector<16x32xf32>, vector<32x64xf32>, vector<16x64xf32> -> vector<16x64xf32>
    %c0_19 = arith.constant 0 : index
    %c0_20 = arith.constant 0 : index
    %34 = vector.load %arg8[%c0_19, %c0_20] : memref<1x64xf32, #tpu.memory_space<vmem>>, vector<1x64xf32>
    %35 = vector.broadcast %34 : vector<1x64xf32> to vector<16x64xf32>
    %36 = arith.addf %33, %35 : vector<16x64xf32>
    %cst_21 = arith.constant 0.000000e+00 : f32
    %37 = vector.broadcast %cst_21 : f32 to vector<16x64xf32>
    %38 = arith.maximumf %36, %37 : vector<16x64xf32>
    %c0_22 = arith.constant 0 : index
    %c0_23 = arith.constant 0 : index
    %39 = vector.load %arg9[%c0_22, %c0_23] : memref<64x32xf32, #tpu.memory_space<vmem>>, vector<64x32xf32>
    %cst_24 = arith.constant dense<0.000000e+00> : vector<16x32xf32>
    %40 = tpu.matmul %38, %39, %cst_24 {dimension_numbers = #tpu.dot_dimension_numbers<[1], [0], [0], [1], [0, 0, 1, 1], [], []>} : vector<16x64xf32>, vector<64x32xf32>, vector<16x32xf32> -> vector<16x32xf32>
    %41 = arith.addf %7, %40 : vector<16x32xf32>
    %c0_25 = arith.constant 0 : index
    %c0_26 = arith.constant 0 : index
    %42 = vector.load %arg10[%c0_25, %c0_26] : memref<1x32xf32, #tpu.memory_space<vmem>>, vector<1x32xf32>
    %43 = vector.broadcast %42 : vector<1x32xf32> to vector<16x32xf32>
    %44 = arith.addf %41, %43 : vector<16x32xf32>
    %c0_27 = arith.constant 0 : index
    %c0_28 = arith.constant 0 : index
    %45 = vector.load %arg11[%c0_27, %c0_28] : memref<16x32xf32, #tpu.memory_space<vmem>>, vector<16x32xf32>
    tpu.vector_store %arg11[%c0_27, %c0_28], %44 {strides = array<i32>} : memref<16x32xf32, #tpu.memory_space<vmem>>, vector<16x32xf32>,
    return
  }
  func.func @transform_0(%arg0: i32) -> (i32, i32) {
    %c0_i32 = arith.constant 0 : i32
    %c0_i32_0 = arith.constant 0 : i32
    %c0_i32_1 = arith.constant 0 : i32
    return %c0_i32, %c0_i32_0 : i32, i32
  }
  func.func @transform_1(%arg0: i32) -> (i32, i32) {
    %c0_i32 = arith.constant 0 : i32
    %c0_i32_0 = arith.constant 0 : i32
    %c0_i32_1 = arith.constant 0 : i32
    return %c0_i32, %c0_i32_0 : i32, i32
  }
  func.func @transform_2(%arg0: i32) -> (i32, i32) {
    %c0_i32 = arith.constant 0 : i32
    %c0_i32_0 = arith.constant 0 : i32
    %c0_i32_1 = arith.constant 0 : i32
    return %c0_i32, %c0_i32_0 : i32, i32
  }
  func.func @transform_3(%arg0: i32) -> (i32, i32) {
    %c0_i32 = arith.constant 0 : i32
    %c0_i32_0 = arith.constant 0 : i32
    %c0_i32_1 = arith.constant 0 : i32
    return %c0_i32, %c0_i32_0 : i32, i32
  }
  func.func @transform_4(%arg0: i32) -> (i32, i32) {
    %c0_i32 = arith.constant 0 : i32
    %c0_i32_0 = arith.constant 0 : i32
    %c0_i32_1 = arith.constant 0 : i32
    return %c0_i32, %c0_i32_0 : i32, i32
  }
  func.func @transform_5(%arg0: i32) -> (i32, i32) {
    %c0_i32 = arith.constant 0 : i32
    %c0_i32_0 = arith.constant 0 : i32
    %c0_i32_1 = arith.constant 0 : i32
    return %c0_i32, %c0_i32_0 : i32, i32
  }
  func.func @transform_6(%arg0: i32) -> (i32, i32) {
    %c0_i32 = arith.constant 0 : i32
    %c0_i32_0 = arith.constant 0 : i32
    %c0_i32_1 = arith.constant 0 : i32
    return %c0_i32, %c0_i32_0 : i32, i32
  }
  func.func @transform_7(%arg0: i32) -> (i32, i32) {
    %c0_i32 = arith.constant 0 : i32
    %c0_i32_0 = arith.constant 0 : i32
    %c0_i32_1 = arith.constant 0 : i32
    return %c0_i32, %c0_i32_0 : i32, i32
  }
  func.func @transform_8(%arg0: i32) -> (i32, i32) {
    %c0_i32 = arith.constant 0 : i32
    %c0_i32_0 = arith.constant 0 : i32
    %c0_i32_1 = arith.constant 0 : i32
    return %c0_i32, %c0_i32_0 : i32, i32
  }
  func.func @transform_9(%arg0: i32) -> (i32, i32) {
    %c0_i32 = arith.constant 0 : i32
    %c0_i32_0 = arith.constant 0 : i32
    %c0_i32_1 = arith.constant 0 : i32
    return %c0_i32, %c0_i32_0 : i32, i32
  }
  func.func @transform_10(%arg0: i32) -> (i32, i32) {
    %c0_i32 = arith.constant 0 : i32
    %c0_i32_0 = arith.constant 0 : i32
    %c0_i32_1 = arith.constant 0 : i32
    return %c0_i32, %c0_i32_0 : i32, i32
  }
}

module attributes {stable_mosaic.version = 11 : i64} {
  func.func @kernel(%arg0: i32, %arg1: memref<1x4x8x8xf32, #tpu.memory_space<vmem>>, %arg2: memref<1x4x8x8xf32, #tpu.memory_space<vmem>>, %arg3: memref<1x4x8x8xf32, #tpu.memory_space<vmem>>, %arg4: memref<1x8x8xi32, #tpu.memory_space<vmem>>, %arg5: memref<1x4x8x8xf32, #tpu.memory_space<vmem>>) attributes {dimension_semantics = [#tpu.dimension_semantics<parallel>], iteration_bounds = array<i64: 2>, scalar_prefetch = 0 : i64, scratch_operands = 0 : i64, tpu.core_type = #tpu.core_type<tc>, window_params = [{transform_indices = @transform_0, window_bounds = array<i64: 1, 4, 8, 8>}, {transform_indices = @transform_1, window_bounds = array<i64: 1, 4, 8, 8>}, {transform_indices = @transform_2, window_bounds = array<i64: 1, 4, 8, 8>}, {transform_indices = @transform_3, window_bounds = array<i64: 1, 8, 8>}, {transform_indices = @transform_4, window_bounds = array<i64: 1, 4, 8, 8>}]} {
    %c0 = arith.constant 0 : index
    %c0_0 = arith.constant 0 : index
    %c0_1 = arith.constant 0 : index
    %c0_2 = arith.constant 0 : index
    %0 = vector.load %arg1[%c0, %c0_0, %c0_1, %c0_2] : memref<1x4x8x8xf32, #tpu.memory_space<vmem>>, vector<1x4x8x8xf32>
    %1 = vector.shape_cast %0 : vector<1x4x8x8xf32> to vector<4x8x8xf32>
    %c0_3 = arith.constant 0 : index
    %c0_4 = arith.constant 0 : index
    %c0_5 = arith.constant 0 : index
    %c0_6 = arith.constant 0 : index
    %2 = vector.load %arg2[%c0_3, %c0_4, %c0_5, %c0_6] : memref<1x4x8x8xf32, #tpu.memory_space<vmem>>, vector<1x4x8x8xf32>
    %3 = vector.shape_cast %2 : vector<1x4x8x8xf32> to vector<4x8x8xf32>
    %c0_7 = arith.constant 0 : index
    %c0_8 = arith.constant 0 : index
    %c0_9 = arith.constant 0 : index
    %c0_10 = arith.constant 0 : index
    %4 = vector.load %arg3[%c0_7, %c0_8, %c0_9, %c0_10] : memref<1x4x8x8xf32, #tpu.memory_space<vmem>>, vector<1x4x8x8xf32>
    %5 = vector.shape_cast %4 : vector<1x4x8x8xf32> to vector<4x8x8xf32>
    %c0_11 = arith.constant 0 : index
    %c0_12 = arith.constant 0 : index
    %c0_13 = arith.constant 0 : index
    %6 = vector.load %arg4[%c0_11, %c0_12, %c0_13] : memref<1x8x8xi32, #tpu.memory_space<vmem>>, vector<1x8x8xi32>
    %7 = vector.shape_cast %6 : vector<1x8x8xi32> to vector<8x8xi32>
    "tpu.trace_start"() <{level = 10 : i32, message = "hqd,hkd->hqk"}> : () -> ()
    %cst = arith.constant dense<0.000000e+00> : vector<4x8x8xf32>
    %8 = tpu.matmul %1, %3, %cst {dimension_numbers = #tpu.dot_dimension_numbers<[2], [2], [1], [1], [0, 0, 0, 1, 1, 1], [0], [0]>} : vector<4x8x8xf32>, vector<4x8x8xf32>, vector<4x8x8xf32> -> vector<4x8x8xf32>
    "tpu.trace_stop"() : () -> ()
    %cst_14 = arith.constant 0.353553385 : f32
    %9 = vector.broadcast %cst_14 : f32 to vector<4x8x8xf32>
    %10 = arith.mulf %8, %9 : vector<4x8x8xf32>
    %11 = vector.shape_cast %7 : vector<8x8xi32> to vector<1x8x8xi32>
    %c0_i32 = arith.constant 0 : i32
    %12 = vector.broadcast %c0_i32 : i32 to vector<1x8x8xi32>
    %13 = arith.cmpi eq, %11, %12 : vector<1x8x8xi32>
    %cst_15 = arith.constant -1.000000e+09 : f32
    %14 = vector.shape_cast %13 : vector<1x8x8xi1> to vector<1x8x8xi1>
    %15 = vector.broadcast %14 : vector<1x8x8xi1> to vector<4x8x8xi1>
    %16 = vector.broadcast %cst_15 : f32 to vector<4x8x8xf32>
    %17 = arith.select %15, %16, %10 : vector<4x8x8xi1>, vector<4x8x8xf32>
    %cst_16 = arith.constant dense<0xFF800000> : vector<4x8xf32>
    %18 = vector.multi_reduction <maximumf>, %17, %cst_16 [2] : vector<4x8x8xf32> to vector<4x8xf32>
    %19 = vector.shape_cast %18 : vector<4x8xf32> to vector<4x8x1xf32>
    %20 = vector.broadcast %19 : vector<4x8x1xf32> to vector<4x8x8xf32>
    %21 = arith.subf %17, %20 : vector<4x8x8xf32>
    %22 = math.exp %21 : vector<4x8x8xf32>
    %cst_17 = arith.constant dense<0.000000e+00> : vector<4x8xf32>
    %23 = vector.multi_reduction <add>, %22, %cst_17 [2] : vector<4x8x8xf32> to vector<4x8xf32>
    %24 = vector.shape_cast %23 : vector<4x8xf32> to vector<4x8x1xf32>
    %25 = tpu.reciprocal %24 {approx = true} : vector<4x8x1xf32> -> vector<4x8x1xf32>
    %26 = vector.broadcast %25 : vector<4x8x1xf32> to vector<4x8x8xf32>
    %27 = arith.mulf %22, %26 : vector<4x8x8xf32>
    "tpu.trace_start"() <{level = 10 : i32, message = "hqk,hkd->hqd"}> : () -> ()
    %cst_18 = arith.constant dense<0.000000e+00> : vector<4x8x8xf32>
    %28 = tpu.matmul %27, %5, %cst_18 {dimension_numbers = #tpu.dot_dimension_numbers<[2], [1], [1], [2], [0, 0, 0, 1, 1, 2], [0], [0]>} : vector<4x8x8xf32>, vector<4x8x8xf32>, vector<4x8x8xf32> -> vector<4x8x8xf32>
    "tpu.trace_stop"() : () -> ()
    %c0_19 = arith.constant 0 : index
    %c0_20 = arith.constant 0 : index
    %c0_21 = arith.constant 0 : index
    %c0_22 = arith.constant 0 : index
    %29 = vector.load %arg5[%c0_19, %c0_20, %c0_21, %c0_22] : memref<1x4x8x8xf32, #tpu.memory_space<vmem>>, vector<1x4x8x8xf32>
    %30 = vector.shape_cast %29 : vector<1x4x8x8xf32> to vector<4x8x8xf32>
    %31 = vector.shape_cast %28 : vector<4x8x8xf32> to vector<1x4x8x8xf32>
    tpu.vector_store %arg5[%c0_19, %c0_20, %c0_21, %c0_22], %31 {strides = array<i32>} : memref<1x4x8x8xf32, #tpu.memory_space<vmem>>, vector<1x4x8x8xf32>,
    return
  }
  func.func @transform_0(%arg0: i32) -> (i32, i32, i32, i32) {
    %c0_i32 = arith.constant 0 : i32
    %c0_i32_0 = arith.constant 0 : i32
    %c0_i32_1 = arith.constant 0 : i32
    %c0_i32_2 = arith.constant 0 : i32
    return %arg0, %c0_i32, %c0_i32_0, %c0_i32_1 : i32, i32, i32, i32
  }
  func.func @transform_1(%arg0: i32) -> (i32, i32, i32, i32) {
    %c0_i32 = arith.constant 0 : i32
    %c0_i32_0 = arith.constant 0 : i32
    %c0_i32_1 = arith.constant 0 : i32
    %c0_i32_2 = arith.constant 0 : i32
    return %arg0, %c0_i32, %c0_i32_0, %c0_i32_1 : i32, i32, i32, i32
  }
  func.func @transform_2(%arg0: i32) -> (i32, i32, i32, i32) {
    %c0_i32 = arith.constant 0 : i32
    %c0_i32_0 = arith.constant 0 : i32
    %c0_i32_1 = arith.constant 0 : i32
    %c0_i32_2 = arith.constant 0 : i32
    return %arg0, %c0_i32, %c0_i32_0, %c0_i32_1 : i32, i32, i32, i32
  }
  func.func @transform_3(%arg0: i32) -> (i32, i32, i32) {
    %c0_i32 = arith.constant 0 : i32
    %c0_i32_0 = arith.constant 0 : i32
    %c0_i32_1 = arith.constant 0 : i32
    return %arg0, %c0_i32, %c0_i32_0 : i32, i32, i32
  }
  func.func @transform_4(%arg0: i32) -> (i32, i32, i32, i32) {
    %c0_i32 = arith.constant 0 : i32
    %c0_i32_0 = arith.constant 0 : i32
    %c0_i32_1 = arith.constant 0 : i32
    %c0_i32_2 = arith.constant 0 : i32
    return %arg0, %c0_i32, %c0_i32_0, %c0_i32_1 : i32, i32, i32, i32
  }
}

module attributes {stable_mosaic.version = 11 : i64} {
  func.func @kernel(%arg0: i32, %arg1: memref<16x32xf32, #tpu.memory_space<vmem>>, %arg2: memref<16x32xf32, #tpu.memory_space<vmem>>, %arg3: memref<32x32xf32, #tpu.memory_space<vmem>>, %arg4: memref<1x32xf32, #tpu.memory_space<vmem>>, %arg5: memref<1x32xf32, #tpu.memory_space<vmem>>, %arg6: memref<1x32xf32, #tpu.memory_space<vmem>>, %arg7: memref<32x32xf32, #tpu.memory_space<vmem>>, %arg8: memref<1x32xf32, #tpu.memory_space<vmem>>, %arg9: memref<16x32xf32, #tpu.memory_space<vmem>>, %arg10: memref<32x64xf32, #tpu.memory_space<vmem>>, %arg11: memref<1x64xf32, #tpu.memory_space<vmem>>, %arg12: memref<16x32xf32, #tpu.memory_space<vmem>>, %arg13: memref<16x32xf32, #tpu.memory_space<vmem>>, %arg14: memref<16x64xf32, #tpu.memory_space<vmem>>) attributes {dimension_semantics = [#tpu.dimension_semantics<arbitrary>], iteration_bounds = array<i64: 1>, scalar_prefetch = 0 : i64, scratch_operands = 0 : i64, tpu.core_type = #tpu.core_type<tc>, window_params = [{pipeline_mode = #tpu.pipeline_mode<synchronous>, transform_indices = @transform_0, window_bounds = array<i64: 16, 32>}, {pipeline_mode = #tpu.pipeline_mode<synchronous>, transform_indices = @transform_1, window_bounds = array<i64: 16, 32>}, {pipeline_mode = #tpu.pipeline_mode<synchronous>, transform_indices = @transform_2, window_bounds = array<i64: 32, 32>}, {pipeline_mode = #tpu.pipeline_mode<synchronous>, transform_indices = @transform_3, window_bounds = array<i64: 1, 32>}, {pipeline_mode = #tpu.pipeline_mode<synchronous>, transform_indices = @transform_4, window_bounds = array<i64: 1, 32>}, {pipeline_mode = #tpu.pipeline_mode<synchronous>, transform_indices = @transform_5, window_bounds = array<i64: 1, 32>}, {pipeline_mode = #tpu.pipeline_mode<synchronous>, transform_indices = @transform_6, window_bounds = array<i64: 32, 32>}, {pipeline_mode = #tpu.pipeline_mode<synchronous>, transform_indices = @transform_7, window_bounds = array<i64: 1, 32>}, {pipeline_mode = #tpu.pipeline_mode<synchronous>, transform_indices = @transform_8, window_bounds = array<i64: 16, 32>}, {pipeline_mode = #tpu.pipeline_mode<synchronous>, transform_indices = @transform_9, window_bounds = array<i64: 32, 64>}, {pipeline_mode = #tpu.pipeline_mode<synchronous>, transform_indices = @transform_10, window_bounds = array<i64: 1, 64>}, {pipeline_mode = #tpu.pipeline_mode<synchronous>, transform_indices = @transform_11, window_bounds = array<i64: 16, 32>}, {pipeline_mode = #tpu.pipeline_mode<synchronous>, transform_indices = @transform_12, window_bounds = array<i64: 16, 32>}, {pipeline_mode = #tpu.pipeline_mode<synchronous>, transform_indices = @transform_13, window_bounds = array<i64: 16, 64>}]} {
    %c0 = arith.constant 0 : index
    %c0_0 = arith.constant 0 : index
    %0 = vector.load %arg2[%c0, %c0_0] : memref<16x32xf32, #tpu.memory_space<vmem>>, vector<16x32xf32>
    %c0_1 = arith.constant 0 : index
    %c0_2 = arith.constant 0 : index
    %1 = vector.load %arg1[%c0_1, %c0_2] : memref<16x32xf32, #tpu.memory_space<vmem>>, vector<16x32xf32>
    %c0_3 = arith.constant 0 : index
    %c0_4 = arith.constant 0 : index
    %2 = vector.load %arg3[%c0_3, %c0_4] : memref<32x32xf32, #tpu.memory_space<vmem>>, vector<32x32xf32>
    %cst = arith.constant dense<0.000000e+00> : vector<16x32xf32>
    %3 = tpu.matmul %1, %2, %cst {dimension_numbers = #tpu.dot_dimension_numbers<[1], [0], [0], [1], [0, 0, 1, 1], [], []>} : vector<16x32xf32>, vector<32x32xf32>, vector<16x32xf32> -> vector<16x32xf32>
    %4 = arith.addf %0, %3 : vector<16x32xf32>
    %c0_5 = arith.constant 0 : index
    %c0_6 = arith.constant 0 : index
    %5 = vector.load %arg4[%c0_5, %c0_6] : memref<1x32xf32, #tpu.memory_space<vmem>>, vector<1x32xf32>
    %6 = vector.broadcast %5 : vector<1x32xf32> to vector<16x32xf32>
    %7 = arith.addf %4, %6 : vector<16x32xf32>
    %c0_7 = arith.constant 0 : index
    %c0_8 = arith.constant 0 : index
    %8 = vector.load %arg12[%c0_7, %c0_8] : memref<16x32xf32, #tpu.memory_space<vmem>>, vector<16x32xf32>
    tpu.vector_store %arg12[%c0_7, %c0_8], %7 {strides = array<i32>} : memref<16x32xf32, #tpu.memory_space<vmem>>, vector<16x32xf32>,
    %c0_9 = arith.constant 0 : index
    %c0_10 = arith.constant 0 : index
    %9 = vector.load %arg5[%c0_9, %c0_10] : memref<1x32xf32, #tpu.memory_space<vmem>>, vector<1x32xf32>
    %c0_11 = arith.constant 0 : index
    %c0_12 = arith.constant 0 : index
    %10 = vector.load %arg6[%c0_11, %c0_12] : memref<1x32xf32, #tpu.memory_space<vmem>>, vector<1x32xf32>
    %cst_13 = arith.constant dense<0.000000e+00> : vector<16xf32>
    %11 = vector.multi_reduction <add>, %7, %cst_13 [1] : vector<16x32xf32> to vector<16xf32>
    %12 = vector.shape_cast %11 : vector<16xf32> to vector<16x1xf32>
    %cst_14 = arith.constant 3.200000e+01 : f32
    %13 = vector.broadcast %cst_14 : f32 to vector<16x1xf32>
    %14 = arith.divf %12, %13 : vector<16x1xf32>
    %15 = vector.broadcast %14 : vector<16x1xf32> to vector<16x32xf32>
    %16 = arith.subf %7, %15 : vector<16x32xf32>
    %17 = arith.mulf %16, %16 : vector<16x32xf32>
    %cst_15 = arith.constant dense<0.000000e+00> : vector<16xf32>
    %18 = vector.multi_reduction <add>, %17, %cst_15 [1] : vector<16x32xf32> to vector<16xf32>
    %19 = vector.shape_cast %18 : vector<16xf32> to vector<16x1xf32>
    %cst_16 = arith.constant 3.100000e+01 : f32
    %20 = vector.broadcast %cst_16 : f32 to vector<16x1xf32>
    %21 = arith.divf %19, %20 : vector<16x1xf32>
    %22 = math.sqrt %21 : vector<16x1xf32>
    %23 = vector.broadcast %14 : vector<16x1xf32> to vector<16x32xf32>
    %24 = arith.subf %7, %23 : vector<16x32xf32>
    %25 = vector.broadcast %9 : vector<1x32xf32> to vector<16x32xf32>
    %26 = arith.mulf %25, %24 : vector<16x32xf32>
    %cst_17 = arith.constant 1.000000e-07 : f32
    %27 = vector.broadcast %cst_17 : f32 to vector<16x1xf32>
    %28 = arith.addf %22, %27 : vector<16x1xf32>
    %29 = vector.broadcast %28 : vector<16x1xf32> to vector<16x32xf32>
    %30 = arith.divf %26, %29 : vector<16x32xf32>
    %31 = vector.broadcast %10 : vector<1x32xf32> to vector<16x32xf32>
    %32 = arith.addf %30, %31 : vector<16x32xf32>
    %c0_18 = arith.constant 0 : index
    %c0_19 = arith.constant 0 : index
    %33 = vector.load %arg7[%c0_18, %c0_19] : memref<32x32xf32, #tpu.memory_space<vmem>>, vector<32x32xf32>
    %cst_20 = arith.constant dense<0.000000e+00> : vector<16x32xf32>
    %34 = tpu.matmul %32, %33, %cst_20 {dimension_numbers = #tpu.dot_dimension_numbers<[1], [0], [0], [1], [0, 0, 1, 1], [], []>} : vector<16x32xf32>, vector<32x32xf32>, vector<16x32xf32> -> vector<16x32xf32>
    %c0_21 = arith.constant 0 : index
    %c0_22 = arith.constant 0 : index
    %35 = vector.load %arg8[%c0_21, %c0_22] : memref<1x32xf32, #tpu.memory_space<vmem>>, vector<1x32xf32>
    %36 = vector.broadcast %35 : vector<1x32xf32> to vector<16x32xf32>
    %37 = arith.addf %34, %36 : vector<16x32xf32>
    %c0_23 = arith.constant 0 : index
    %c0_24 = arith.constant 0 : index
    %38 = vector.load %arg13[%c0_23, %c0_24] : memref<16x32xf32, #tpu.memory_space<vmem>>, vector<16x32xf32>
    tpu.vector_store %arg13[%c0_23, %c0_24], %37 {strides = array<i32>} : memref<16x32xf32, #tpu.memory_space<vmem>>, vector<16x32xf32>,
    %c0_25 = arith.constant 0 : index
    %c0_26 = arith.constant 0 : index
    %39 = vector.load %arg9[%c0_25, %c0_26] : memref<16x32xf32, #tpu.memory_space<vmem>>, vector<16x32xf32>
    %c0_27 = arith.constant 0 : index
    %c0_28 = arith.constant 0 : index
    %40 = vector.load %arg10[%c0_27, %c0_28] : memref<32x64xf32, #tpu.memory_space<vmem>>, vector<32x64xf32>
    %cst_29 = arith.constant dense<0.000000e+00> : vector<16x64xf32>
    %41 = tpu.matmul %39, %40, %cst_29 {dimension_numbers = #tpu.dot_dimension_numbers<[1], [0], [0], [1], [0, 0, 1, 1], [], []>} : vector<16x32xf32>, vector<32x64xf32>, vector<16x64xf32> -> vector<16x64xf32>
    %c0_30 = arith.constant 0 : index
    %c0_31 = arith.constant 0 : index
    %42 = vector.load %arg11[%c0_30, %c0_31] : memref<1x64xf32, #tpu.memory_space<vmem>>, vector<1x64xf32>
    %43 = vector.broadcast %42 : vector<1x64xf32> to vector<16x64xf32>
    %44 = arith.addf %41, %43 : vector<16x64xf32>
    %c0_32 = arith.constant 0 : index
    %c0_33 = arith.constant 0 : index
    %45 = vector.load %arg14[%c0_32, %c0_33] : memref<16x64xf32, #tpu.memory_space<vmem>>, vector<16x64xf32>
    tpu.vector_store %arg14[%c0_32, %c0_33], %44 {strides = array<i32>} : memref<16x64xf32, #tpu.memory_space<vmem>>, vector<16x64xf32>,
    return
  }
  func.func @transform_0(%arg0: i32) -> (i32, i32) {
    %c0_i32 = arith.constant 0 : i32
    %c0_i32_0 = arith.constant 0 : i32
    %c0_i32_1 = arith.constant 0 : i32
    return %c0_i32, %c0_i32_0 : i32, i32
  }
  func.func @transform_1(%arg0: i32) -> (i32, i32) {
    %c0_i32 = arith.constant 0 : i32
    %c0_i32_0 = arith.constant 0 : i32
    %c0_i32_1 = arith.constant 0 : i32
    return %c0_i32, %c0_i32_0 : i32, i32
  }
  func.func @transform_2(%arg0: i32) -> (i32, i32) {
    %c0_i32 = arith.constant 0 : i32
    %c0_i32_0 = arith.constant 0 : i32
    %c0_i32_1 = arith.constant 0 : i32
    return %c0_i32, %c0_i32_0 : i32, i32
  }
  func.func @transform_3(%arg0: i32) -> (i32, i32) {
    %c0_i32 = arith.constant 0 : i32
    %c0_i32_0 = arith.constant 0 : i32
    %c0_i32_1 = arith.constant 0 : i32
    return %c0_i32, %c0_i32_0 : i32, i32
  }
  func.func @transform_4(%arg0: i32) -> (i32, i32) {
    %c0_i32 = arith.constant 0 : i32
    %c0_i32_0 = arith.constant 0 : i32
    %c0_i32_1 = arith.constant 0 : i32
    return %c0_i32, %c0_i32_0 : i32, i32
  }
  func.func @transform_5(%arg0: i32) -> (i32, i32) {
    %c0_i32 = arith.constant 0 : i32
    %c0_i32_0 = arith.constant 0 : i32
    %c0_i32_1 = arith.constant 0 : i32
    return %c0_i32, %c0_i32_0 : i32, i32
  }
  func.func @transform_6(%arg0: i32) -> (i32, i32) {
    %c0_i32 = arith.constant 0 : i32
    %c0_i32_0 = arith.constant 0 : i32
    %c0_i32_1 = arith.constant 0 : i32
    return %c0_i32, %c0_i32_0 : i32, i32
  }
  func.func @transform_7(%arg0: i32) -> (i32, i32) {
    %c0_i32 = arith.constant 0 : i32
    %c0_i32_0 = arith.constant 0 : i32
    %c0_i32_1 = arith.constant 0 : i32
    return %c0_i32, %c0_i32_0 : i32, i32
  }
  func.func @transform_8(%arg0: i32) -> (i32, i32) {
    %c0_i32 = arith.constant 0 : i32
    %c0_i32_0 = arith.constant 0 : i32
    %c0_i32_1 = arith.constant 0 : i32
    return %c0_i32, %c0_i32_0 : i32, i32
  }
  func.func @transform_9(%arg0: i32) -> (i32, i32) {
    %c0_i32 = arith.constant 0 : i32
    %c0_i32_0 = arith.constant 0 : i32
    %c0_i32_1 = arith.constant 0 : i32
    return %c0_i32, %c0_i32_0 : i32, i32
  }
  func.func @transform_10(%arg0: i32) -> (i32, i32) {
    %c0_i32 = arith.constant 0 : i32
    %c0_i32_0 = arith.constant 0 : i32
    %c0_i32_1 = arith.constant 0 : i32
    return %c0_i32, %c0_i32_0 : i32, i32
  }
  func.func @transform_11(%arg0: i32) -> (i32, i32) {
    %c0_i32 = arith.constant 0 : i32
    %c0_i32_0 = arith.constant 0 : i32
    %c0_i32_1 = arith.constant 0 : i32
    return %c0_i32, %c0_i32_0 : i32, i32
  }
  func.func @transform_12(%arg0: i32) -> (i32, i32) {
    %c0_i32 = arith.constant 0 : i32
    %c0_i32_0 = arith.constant 0 : i32
    %c0_i32_1 = arith.constant 0 : i32
    return %c0_i32, %c0_i32_0 : i32, i32
  }
  func.func @transform_13(%arg0: i32) -> (i32, i32) {
    %c0_i32 = arith.constant 0 : i32
    %c0_i32_0 = arith.constant 0 : i32
    %c0_i32_1 = arith.constant 0 : i32
    return %c0_i32, %c0_i32_0 : i32, i32
  }
}

module attributes {stable_mosaic.version = 11 : i64} {
  func.func @kernel(%arg0: i32, %arg1: memref<16x32xf32, #tpu.memory_space<vmem>>, %arg2: memref<1x32xf32, #tpu.memory_space<vmem>>, %arg3: memref<1x32xf32, #tpu.memory_space<vmem>>, %arg4: memref<32x128xf32, #tpu.memory_space<vmem>>, %arg5: memref<1x128xf32, #tpu.memory_space<vmem>>, %arg6: memref<16x128xf32, #tpu.memory_space<vmem>>) attributes {dimension_semantics = [#tpu.dimension_semantics<arbitrary>], iteration_bounds = array<i64: 1>, scalar_prefetch = 0 : i64, scratch_operands = 0 : i64, tpu.core_type = #tpu.core_type<tc>, window_params = [{pipeline_mode = #tpu.pipeline_mode<synchronous>, transform_indices = @transform_0, window_bounds = array<i64: 16, 32>}, {pipeline_mode = #tpu.pipeline_mode<synchronous>, transform_indices = @transform_1, window_bounds = array<i64: 1, 32>}, {pipeline_mode = #tpu.pipeline_mode<synchronous>, transform_indices = @transform_2, window_bounds = array<i64: 1, 32>}, {pipeline_mode = #tpu.pipeline_mode<synchronous>, transform_indices = @transform_3, window_bounds = array<i64: 32, 128>}, {pipeline_mode = #tpu.pipeline_mode<synchronous>, transform_indices = @transform_4, window_bounds = array<i64: 1, 128>}, {pipeline_mode = #tpu.pipeline_mode<synchronous>, transform_indices = @transform_5, window_bounds = array<i64: 16, 128>}]} {
    %c0 = arith.constant 0 : index
    %c0_0 = arith.constant 0 : index
    %0 = vector.load %arg1[%c0, %c0_0] : memref<16x32xf32, #tpu.memory_space<vmem>>, vector<16x32xf32>
    %c0_1 = arith.constant 0 : index
    %c0_2 = arith.constant 0 : index
    %1 = vector.load %arg2[%c0_1, %c0_2] : memref<1x32xf32, #tpu.memory_space<vmem>>, vector<1x32xf32>
    %c0_3 = arith.constant 0 : index
    %c0_4 = arith.constant 0 : index
    %2 = vector.load %arg3[%c0_3, %c0_4] : memref<1x32xf32, #tpu.memory_space<vmem>>, vector<1x32xf32>
    %cst = arith.constant dense<0.000000e+00> : vector<16xf32>
    %3 = vector.multi_reduction <add>, %0, %cst [1] : vector<16x32xf32> to vector<16xf32>
    %4 = vector.shape_cast %3 : vector<16xf32> to vector<16x1xf32>
    %cst_5 = arith.constant 3.200000e+01 : f32
    %5 = vector.broadcast %cst_5 : f32 to vector<16x1xf32>
    %6 = arith.divf %4, %5 : vector<16x1xf32>
    %7 = vector.broadcast %6 : vector<16x1xf32> to vector<16x32xf32>
    %8 = arith.subf %0, %7 : vector<16x32xf32>
    %9 = arith.mulf %8, %8 : vector<16x32xf32>
    %cst_6 = arith.constant dense<0.000000e+00> : vector<16xf32>
    %10 = vector.multi_reduction <add>, %9, %cst_6 [1] : vector<16x32xf32> to vector<16xf32>
    %11 = vector.shape_cast %10 : vector<16xf32> to vector<16x1xf32>
    %cst_7 = arith.constant 3.100000e+01 : f32
    %12 = vector.broadcast %cst_7 : f32 to vector<16x1xf32>
    %13 = arith.divf %11, %12 : vector<16x1xf32>
    %14 = math.sqrt %13 : vector<16x1xf32>
    %15 = vector.broadcast %6 : vector<16x1xf32> to vector<16x32xf32>
    %16 = arith.subf %0, %15 : vector<16x32xf32>
    %17 = vector.broadcast %1 : vector<1x32xf32> to vector<16x32xf32>
    %18 = arith.mulf %17, %16 : vector<16x32xf32>
    %cst_8 = arith.constant 1.000000e-07 : f32
    %19 = vector.broadcast %cst_8 : f32 to vector<16x1xf32>
    %20 = arith.addf %14, %19 : vector<16x1xf32>
    %21 = vector.broadcast %20 : vector<16x1xf32> to vector<16x32xf32>
    %22 = arith.divf %18, %21 : vector<16x32xf32>
    %23 = vector.broadcast %2 : vector<1x32xf32> to vector<16x32xf32>
    %24 = arith.addf %22, %23 : vector<16x32xf32>
    %c0_9 = arith.constant 0 : index
    %c0_10 = arith.constant 0 : index
    %25 = vector.load %arg4[%c0_9, %c0_10] : memref<32x128xf32, #tpu.memory_space<vmem>>, vector<32x128xf32>
    %cst_11 = arith.constant dense<0.000000e+00> : vector<16x128xf32>
    %26 = tpu.matmul %24, %25, %cst_11 {dimension_numbers = #tpu.dot_dimension_numbers<[1], [0], [0], [1], [0, 0, 1, 1], [], []>} : vector<16x32xf32>, vector<32x128xf32>, vector<16x128xf32> -> vector<16x128xf32>
    %c0_12 = arith.constant 0 : index
    %c0_13 = arith.constant 0 : index
    %27 = vector.load %arg5[%c0_12, %c0_13] : memref<1x128xf32, #tpu.memory_space<vmem>>, vector<1x128xf32>
    %28 = vector.broadcast %27 : vector<1x128xf32> to vector<16x128xf32>
    %29 = arith.addf %26, %28 : vector<16x128xf32>
    %c0_14 = arith.constant 0 : index
    %c0_15 = arith.constant 0 : index
    %30 = vector.load %arg6[%c0_14, %c0_15] : memref<16x128xf32, #tpu.memory_space<vmem>>, vector<16x128xf32>
    tpu.vector_store %arg6[%c0_14, %c0_15], %29 {strides = array<i32>} : memref<16x128xf32, #tpu.memory_space<vmem>>, vector<16x128xf32>,
    return
  }
  func.func @transform_0(%arg0: i32) -> (i32, i32) {
    %c0_i32 = arith.constant 0 : i32
    %c0_i32_0 = arith.constant 0 : i32
    %c0_i32_1 = arith.constant 0 : i32
    return %c0_i32, %c0_i32_0 : i32, i32
  }
  func.func @transform_1(%arg0: i32) -> (i32, i32) {
    %c0_i32 = arith.constant 0 : i32
    %c0_i32_0 = arith.constant 0 : i32
    %c0_i32_1 = arith.constant 0 : i32
    return %c0_i32, %c0_i32_0 : i32, i32
  }
  func.func @transform_2(%arg0: i32) -> (i32, i32) {
    %c0_i32 = arith.constant 0 : i32
    %c0_i32_0 = arith.constant 0 : i32
    %c0_i32_1 = arith.constant 0 : i32
    return %c0_i32, %c0_i32_0 : i32, i32
  }
  func.func @transform_3(%arg0: i32) -> (i32, i32) {
    %c0_i32 = arith.constant 0 : i32
    %c0_i32_0 = arith.constant 0 : i32
    %c0_i32_1 = arith.constant 0 : i32
    return %c0_i32, %c0_i32_0 : i32, i32
  }
  func.func @transform_4(%arg0: i32) -> (i32, i32) {
    %c0_i32 = arith.constant 0 : i32
    %c0_i32_0 = arith.constant 0 : i32
    %c0_i32_1 = arith.constant 0 : i32
    return %c0_i32, %c0_i32_0 : i32, i32
  }
  func.func @transform_5(%arg0: i32) -> (i32, i32) {
    %c0_i32 = arith.constant 0 : i32
    %c0_i32_0 = arith.constant 0 : i32
    %c0_i32_1 = arith.constant 0 : i32
    return %c0_i32, %c0_i32_0 : i32, i32
  }
}

</mosaic_0001>

<bundles_post_ra>
// kernel: punc_transformer_fwd.30
= control target key start
LH: loop header
LB: loop body
LE: loop exit
PB: predicated region body
PF: predicated region fallthrough
CT: control target
= control target key end

     0   :  { %s700_s15 = smov 0   ;;  %s768_s0 = inlined_call_operand.vmem [shape: f32[2,4,8,8], index: 0, kind: input, shape index: {}]   ;;  %s769_s1 = inlined_call_operand.vmem [shape: f32[2,4,8,8], index: 1, kind: input, shape index: {}]   ;;  %s770_s2 = inlined_call_operand.vmem [shape: f32[2,4,8,8], index: 2, kind: input, shape index: {}]   ;;  %s771_s3 = inlined_call_operand.vmem [shape: s32[2,1,8], index: 3, kind: input, shape index: {}]   ;;  %s772_s4 = inlined_call_operand.vmem [shape: f32[2,4,8,8], index: 4, kind: output, shape index: {}]  }
   0x1 LB: > { %s610_s16 = sadd.s32 4294967295, %s672_s15   ;;  %p614_p0 = scmp.ge.s32.totalorder %s672_s15, 1  ;;  %s672_s15 = sphi %s700_s15, %s14_s15  }
   0x2   : > { %p190_p1 = scmp.lt.s32.totalorder %s672_s15, 3 }
   0x4   : > { %p191_p2 = pnand %p614_p0, %p190_p1 }
   0x5   : > { %p229_p3 = scmp.lt.s32.totalorder (!%p191_p2), %s610_s16, 1 }
   0x6   : > { %194 = sbr.rel (%p191_p2) target bundleno = 548 (0x224), region = 36 }
   0xb   : > { %s776_s16 = smov (!%p229_p3, %s610_s16), 1  ;;  %vm265_vm0 = vcmask 64512   ;;  %v674_v9 = vmov 0  }
   0xc   : > { %s708_s17 = sshll.u32 %s776_s16, 5  ;;  %s246_s26 = scalar_lea.vmem %s771_s3, %s776_s16 }
   0xd   : > { %s238_s20 = scalar_lea.vmem %s769_s1, %s708_s17  ;;  %s233_s23 = scalar_lea.vmem %s768_s0, %s708_s17  ;;  %v264_v8 = vld [vmem:[%s246_s26] sm:$0x1] }
   0xe   : > { %v256_v0 = vld [vmem:[%s238_s20] sm:$0xff]  ;;  %v258_v1 = vld [vmem:[%s238_s20 + $0x10] sm:$0xff]  ;;  %v257_v4 = vld [vmem:[%s238_s20 + $0x8] sm:$0xff]  ;;  %vm374_vm1 = vcmp.eq.s32.totalorder %v264_v8, 0  ;;  %s243_s29 = scalar_lea.vmem %s770_s2, %s708_s17  ;;  %s251_s6 = scalar_lea.vmem %s772_s4, %s708_s17 }
   0xf   : > { %v252_v2 = vld [vmem:[%s233_s23] sm:$0xff]  ;;  %623 = vmatpush.xpose.msk.msra.mxu0 %vm265_vm0, %v256_v0  ;;  %627 = vmatpush.xpose.msk.msra.mxu2 %vm265_vm0, %v258_v1  ;;  %v254_v3 = vld [vmem:[%s233_s23 + $0x10] sm:$0xff]  ;;  %v259_v5 = vld [vmem:[%s238_s20 + $0x18] sm:$0xff]  ;;  %v375_v10 = vsel %vm374_vm1, 1, %v674_v9 }
  0x10   : > { %625 = vmatpush.xpose.msk.msra.mxu1 %vm265_vm0, %v257_v4  ;;  %629 = vmatpush.xpose.msk.msra.mxu3 %vm265_vm0, %v259_v5  ;;  %v253_v6 = vld [vmem:[%s233_s23 + $0x8] sm:$0xff]  ;;  %v255_v7 = vld [vmem:[%s233_s23 + $0x18] sm:$0xff]  ;;  %v376_v11 = vperm.slane %v375_v10, 0  ;;  %v260_v49 = vld [vmem:[%s243_s29] sm:$0xff] }
  0x11   : > { %v262_v50 = vld [vmem:[%s243_s29 + $0x10] sm:$0xff]  ;;  %v261_v51 = vld [vmem:[%s243_s29 + $0x8] sm:$0xff]  ;;  %v263_v52 = vld [vmem:[%s243_s29 + $0x18] sm:$0xff] }
  0x12   : > { %624 = vmatmul.msk.f32.vlgmr.msra.gmra.mxu0 %vm265_vm0, %v252_v2  ;;  %628 = vmatmul.msk.f32.vlgmr.msra.gmra.mxu2 %vm265_vm0, %v254_v3  ;;  %vm729_vm2 = vcmp.eq.s32.totalorder %v376_v11, 1 }
  0x13   : > { %626 = vmatmul.msk.f32.vlgmr.msra.gmra.mxu1 %vm265_vm0, %v253_v6  ;;  %630 = vmatmul.msk.f32.vlgmr.msra.gmra.mxu3 %vm265_vm0, %v255_v7 }
  0x14   : > { %444 = vmatpush.msrb.mxu0 %v260_v49  ;;  %490 = vmatpush.msrb.mxu2 %v262_v50 }
  0x15   : > { %467 = vmatpush.msrb.mxu1 %v261_v51  ;;  %513 = vmatpush.msrb.mxu3 %v263_v52 }
  0x8f   : > { %v289_v12 = vpop.f32.mrf.mxu0 }
  0x90   : > { %v370_v14 = vmul.f32 0.35355338, %v289_v12  ;;  %v315_v15 = vpop.f32.mrf.mxu1 }
  0x91   : > { %v371_v17 = vmul.f32 0.35355338, %v315_v15 }
  0x92   : > { %v378_v16 = vsel %vm729_vm2, -1e+09, %v370_v14 }
  0x93   : > { %v382_v18 = vsel %vm265_vm0, %v378_v16, -inf  ;;  %v379_v21 = vsel %vm729_vm2, -1e+09, %v371_v17 }
  0x94   : > { %383 = vmax.xlane.f32.xlu1 %v382_v18  ;;  %v385_v26 = vsel %vm265_vm0, %v379_v21, -inf }
  0x95   : > { %v341_v19 = vpop.f32.mrf.mxu2 }
  0x96   : > { %v372_v20 = vmul.f32 0.35355338, %v341_v19  ;;  %v367_v22 = vpop.f32.mrf.mxu3 }
  0x97   : > { %v373_v24 = vmul.f32 0.35355338, %v367_v22 }
  0x98   : > { %v380_v23 = vsel %vm729_vm2, -1e+09, %v372_v20 }
  0x99   : > { %v388_v25 = vsel %vm265_vm0, %v380_v23, -inf  ;;  %v381_v27 = vsel %vm729_vm2, -1e+09, %v373_v24 }
  0x9a   : > { %389 = vmax.xlane.f32.xlu0 %v388_v25  ;;  %v391_v28 = vsel %vm265_vm0, %v381_v27, -inf }
  0x9c   : > { %386 = vmax.xlane.f32.xlu1 %v385_v26 }
  0xa2   : > { %392 = vmax.xlane.f32.xlu0 %v391_v28 }
 0x107   : > { %v384_v29 = vpop.xlane.xlu1 %383 }
 0x108   : > { %v394_v30 = vsub.f32 %v378_v16, %v384_v29 }
 0x10a   : > { %v398_v31 = vmul.f32 1.442695, %v394_v30 }
 0x10c   : > { %650 = vpow2.f32 %v398_v31 }
 0x10d   : > { %v390_v32 = vpop.xlane.xlu0 %389 }
 0x10e   : > { %v396_v33 = vsub.f32 %v380_v23, %v390_v32 }
 0x10f   : > { %v387_v34 = vpop.xlane.xlu1 %386 }
 0x110   : > { %v402_v35 = vmul.f32 1.442695, %v396_v33  ;;  %v395_v36 = vsub.f32 %v379_v21, %v387_v34 }
 0x112   : > { %v651_v37 = vpop.eup %650  ;;  %652 = vpow2.f32 %v402_v35  ;;  %v400_v38 = vmul.f32 1.442695, %v395_v36 }
 0x113   : > { %v406_v39 = vsel %vm265_vm0, %v651_v37, 0.0 }
 0x114   : > { %654 = vpow2.f32 %v400_v38  ;;  %407 = vadd.xlane.f32.xlu0 %v406_v39 }
 0x115   : > { %v393_v40 = vpop.xlane.xlu0 %392 }
 0x116   : > { %v397_v41 = vsub.f32 %v381_v27, %v393_v40 }
 0x118   : > { %v653_v42 = vpop.eup %652  ;;  %v404_v43 = vmul.f32 1.442695, %v397_v41 }
 0x119   : > { %v412_v44 = vsel %vm265_vm0, %v653_v42, 0.0 }
 0x11a   : > { %v655_v45 = vpop.eup %654  ;;  %656 = vpow2.f32 %v404_v43  ;;  %413 = vadd.xlane.f32.xlu2 %v412_v44 }
 0x11b   : > { %v409_v46 = vsel %vm265_vm0, %v655_v45, 0.0 }
 0x11c   : > { %410 = vadd.xlane.f32.xlu1 %v409_v46 }
 0x120   : > { %v657_v47 = vpop.eup %656 }
 0x121   : > { %v415_v48 = vsel %vm265_vm0, %v657_v47, 0.0 }
 0x122   : > { %416 = vadd.xlane.f32.xlu2 %v415_v48 }
 0x187   : > { %v408_v53 = vpop.xlane.xlu0 %407 }
 0x188   : > { %658 = vrcp.f32 %v408_v53 }
 0x18d   : > { %v414_v54 = vpop.xlane.xlu2 %413 }
 0x18e   : > { %v659_v55 = vpop.eup %658  ;;  %660 = vrcp.f32 %v414_v54 }
 0x18f   : > { %v422_v56 = vmul.f32 %v659_v55, %v651_v37  ;;  %v411_v57 = vpop.xlane.xlu1 %410 }
 0x190   : > { %662 = vrcp.f32 %v411_v57 }
 0x191   : > { %631 = vmatmul.msk.f32.vlgmr.msrb.gmra.mxu0 %vm265_vm0, %v422_v56 }
 0x194   : > { %v661_v58 = vpop.eup %660 }
 0x195   : > { %v417_v59 = vpop.xlane.xlu2 %416  ;;  %v424_v60 = vmul.f32 %v661_v58, %v653_v42 }
 0x196   : > { %v663_v61 = vpop.eup %662  ;;  %664 = vrcp.f32 %v417_v59 }
 0x197   : > { %v423_v62 = vmul.f32 %v663_v61, %v655_v45  ;;  %633 = vmatmul.msk.f32.vlgmr.msrb.gmra.mxu2 %vm265_vm0, %v424_v60 }
 0x199   : > { %632 = vmatmul.msk.f32.vlgmr.msrb.gmra.mxu1 %vm265_vm0, %v423_v62 }
 0x19c   : > { %v665_v63 = vpop.eup %664 }
 0x19d   : > { %v425_v0 = vmul.f32 %v665_v63, %v657_v47 }
 0x19f   : > { %634 = vmatmul.msk.f32.vlgmr.msrb.gmra.mxu3 %vm265_vm0, %v425_v0 }
 0x20e   : > { %v446_v1 = vpop.f32.mrf.mxu0 }
 0x20f   : > { %518 = vst.msk [vmem:[%s251_s6] sm:$0xff] %vm265_vm0, %v446_v1 }
 0x216   : > { %v469_v2 = vpop.f32.mrf.mxu1 }
 0x217   : > { %519 = vst.msk [vmem:[%s251_s6 + $0x8] sm:$0xff] %vm265_vm0, %v469_v2 }
 0x21a   : > { %v492_v3 = vpop.f32.mrf.mxu2 }
 0x21b   : > { %520 = vst.msk [vmem:[%s251_s6 + $0x10] sm:$0xff] %vm265_vm0, %v492_v3 }
 0x222   : > { %v515_v4 = vpop.f32.mrf.mxu3 }
 0x223   : > { %521 = vst.msk [vmem:[%s251_s6 + $0x18] sm:$0xff] %vm265_vm0, %v515_v4 }
 0x224 PF: > { %s14_s15 = sadd.s32 1, %s672_s15  }
 0x225   : > { %p11_p4 = scmp.ge.s32.totalorder %s14_s15, 4  }
 0x227   :  { %13 = sbr.rel (!%p11_p4) target bundleno = 1 (0x1), region = 75 }

// kernel: punc_transformer_fwd.29
= control target key start
LH: loop header
LB: loop body
LE: loop exit
PB: predicated region body
PF: predicated region fallthrough
CT: control target
= control target key end

     0   :  { %vm24_vm0 = vcmask 261120   ;;  %v192_v4 = vmov 32.0   ;;  %v193_v24 = vmov 31.0   ;;  %vm162_vm15 = vcmask 785408   ;;  %s269_s0 = inlined_call_operand.vmem [shape: f32[16,32], index: 0, kind: input, shape index: {}]   ;;  %s270_s1 = inlined_call_operand.vmem [shape: f32[1,32], index: 1, kind: input, shape index: {}]   ;;  %s271_s2 = inlined_call_operand.vmem [shape: f32[1,32], index: 2, kind: input, shape index: {}]   ;;  %s272_s4 = inlined_call_operand.vmem [shape: f32[1,96], index: 4, kind: input, shape index: {}]   ;;  %s273_s3 = inlined_call_operand.vmem [shape: f32[32,96], index: 3, kind: input, shape index: {}]   ;;  %s274_s5 = inlined_call_operand.vmem [shape: f32[16,96], index: 5, kind: output, shape index: {}]  }
   0x1   :  { %v20_v0 = vld [vmem:[%s269_s0] sm:$0xff]  ;;  %v21_v2 = vld [vmem:[%s269_s0 + $0x8] sm:$0xff]  ;;  %180 = vrcp.f32 %v192_v4  ;;  %v128_v30 = vld [vmem:[%s273_s3 + $0x18] sm:$0xff] }
   0x2   :  { %v25_v1 = vsel %vm24_vm0, %v20_v0, 0.0  ;;  %v28_v3 = vsel %vm24_vm0, %v21_v2, 0.0  ;;  %v177_v12 = vld [vmem:[%s270_s1] ss:$0 sm:$0xff]  ;;  %182 = vrcp.f32 %v193_v24  ;;  %v127_v31 = vld [vmem:[%s273_s3 + $0x10] sm:$0xff]  ;;  %151 = vmatpush.msra.mxu0 %v128_v30  ;;  %171 = vmatpush.msra.mxu1 %v128_v30  ;;  %v126_v33 = vld [vmem:[%s273_s3 + $0x8] sm:$0xff] }
   0x3   :  { %26 = vadd.xlane.f32.xlu0 %v25_v1  ;;  %v125_v35 = vld [vmem:[%s273_s3] sm:$0xff] }
   0x4   :  { %152 = vmatpush.msra.mxu0 %v127_v31  ;;  %172 = vmatpush.msra.mxu1 %v127_v31 }
   0x6   :  { %153 = vmatpush.msra.mxu0 %v126_v33  ;;  %173 = vmatpush.msra.mxu1 %v126_v33 }
   0x7   :  { %v181_v5 = vpop.eup %180 }
   0x8   :  { %v32_v6 = vmul.f32 32.0, %v181_v5  ;;  %vm36_vm1 = vweird.f32 %v181_v5  ;;  %v183_v25 = vpop.eup %182  ;;  %154 = vmatpush.msra.mxu0 %v125_v35  ;;  %174 = vmatpush.msra.mxu1 %v125_v35 }
   0x9   :  { %v51_v26 = vmul.f32 31.0, %v183_v25  ;;  %vm55_vm2 = vweird.f32 %v183_v25 }
   0xa   :  { %v33_v7 = vsub.f32 1.0, %v32_v6 }
   0xb   :  { %29 = vadd.xlane.f32.xlu0 %v28_v3  ;;  %v52_v27 = vsub.f32 1.0, %v51_v26 }
   0xc   :  { %v34_v8 = vmul.f32 %v181_v5, %v33_v7  ;;  %v178_v7 = vld [vmem:[%s271_s2] ss:$0 sm:$0xff] }
   0xd   :  { %v53_v28 = vmul.f32 %v183_v25, %v52_v27 }
   0xe   :  { %v35_v9 = vadd.f32 %v181_v5, %v34_v8 }
   0xf   :  { %v54_v29 = vadd.f32 %v183_v25, %v53_v28 }
  0x10   :  { %v37_v10 = vsel %vm36_vm1, %v181_v5, %v35_v9 }
  0x11   :  { %v56_v32 = vsel %vm55_vm2, %v183_v25, %v54_v29 }
  0x76   :  { %v27_v11 = vpop.xlane.xlu0 %26 }
  0x77   :  { %v38_v13 = vmul.f32 %v37_v10, %v27_v11 }
  0x79   :  { %v40_v14 = vsub.f32 %v20_v0, %v38_v13 }
  0x7b   :  { %v235_v15 = vmul.f32 %v177_v12, %v40_v14  ;;  %v42_v16 = vmul.f32 %v40_v14, %v40_v14 }
  0x7d   :  { %v44_v17 = vsel %vm24_vm0, %v42_v16, 0.0 }
  0x7e   :  { %45 = vadd.xlane.f32.xlu1 %v44_v17  ;;  %v30_v18 = vpop.xlane.xlu0 %29 }
  0x7f   :  { %v39_v19 = vmul.f32 %v37_v10, %v30_v18 }
  0x81   :  { %v41_v20 = vsub.f32 %v21_v2, %v39_v19 }
  0x83   :  { %v238_v21 = vmul.f32 %v177_v12, %v41_v20  ;;  %v43_v22 = vmul.f32 %v41_v20, %v41_v20 }
  0x85   :  { %v47_v23 = vsel %vm24_vm0, %v43_v22, 0.0 }
  0x86   :  { %48 = vadd.xlane.f32.xlu1 %v47_v23 }
  0xf1   :  { %v46_v34 = vpop.xlane.xlu1 %45 }
  0xf2   :  { %v57_v36 = vmul.f32 %v56_v32, %v46_v34 }
  0xf4   :  { %184 = vrsqrt.f32 %v57_v36  ;;  %vm66_vm3 = vcmp.eq.f32.partialorder %v57_v36, inf  ;;  %v69_v49 = vand.u32 2147483648, %v57_v36  ;;  %vm68_vm4 = vcmp.eq.f32.partialorder %v57_v36, 0.0 }
  0xf9   :  { %v49_v37 = vpop.xlane.xlu1 %48 }
  0xfa   :  { %v185_v38 = vpop.eup %184  ;;  %v58_v39 = vmul.f32 %v56_v32, %v49_v37 }
  0xfb   :  { %v60_v40 = vmul.f32 %v185_v38, %v57_v36 }
  0xfc   :  { %186 = vrsqrt.f32 %v58_v39  ;;  %vm78_vm5 = vcmp.eq.f32.partialorder %v58_v39, inf  ;;  %v81_v57 = vand.u32 2147483648, %v58_v39  ;;  %vm80_vm6 = vcmp.eq.f32.partialorder %v58_v39, 0.0 }
  0xfd   :  { %v61_v41 = vmul.f32 %v185_v38, %v60_v40 }
  0xff   :  { %v62_v42 = vmul.f32 0.5, %v61_v41 }
 0x101   :  { %v63_v43 = vsub.f32 1.5, %v62_v42 }
 0x102   :  { %v187_v44 = vpop.eup %186 }
 0x103   :  { %v64_v45 = vmul.f32 %v185_v38, %v63_v43  ;;  %v72_v46 = vmul.f32 %v187_v44, %v58_v39 }
 0x105   :  { %v65_v47 = vmul.f32 %v64_v45, %v57_v36  ;;  %v73_v48 = vmul.f32 %v187_v44, %v72_v46 }
 0x107   :  { %v74_v50 = vmul.f32 0.5, %v73_v48  ;;  %v67_v51 = vsel %vm66_vm3, %v57_v36, %v65_v47 }
 0x108   :  { %v70_v52 = vsel %vm68_vm4, %v69_v49, %v67_v51 }
 0x109   :  { %v75_v53 = vsub.f32 1.5, %v74_v50  ;;  %v88_v54 = vadd.f32 1e-07, %v70_v52 }
 0x10b   :  { %v76_v55 = vmul.f32 %v187_v44, %v75_v53  ;;  %188 = vrcp.f32 %v88_v54  ;;  %v101_v0 = vand.u32 2147483648, %v88_v54  ;;  %v99_v2 = vand.u32 2147483647, %v88_v54 }
 0x10c   :  { %vm95_vm8 = vweird.f32 %v88_v54 }
 0x10d   :  { %v77_v56 = vmul.f32 %v76_v55, %v58_v39  ;;  %v102_v5 = vor.u32 1.1754944e-38, %v101_v0  ;;  %vm100_vm10 = vcmp.eq.f32.partialorder %v99_v2, 8.507059e+37 }
 0x10f   :  { %v79_v58 = vsel %vm78_vm5, %v58_v39, %v77_v56 }
 0x110   :  { %v82_v59 = vsel %vm80_vm6, %v81_v57, %v79_v58 }
 0x111   :  { %v189_v60 = vpop.eup %188  ;;  %v89_v61 = vadd.f32 1e-07, %v82_v59 }
 0x112   :  { %v91_v62 = vmul.f32 %v189_v60, %v88_v54  ;;  %vm96_vm7 = vweird.f32 %v189_v60 }
 0x113   :  { %190 = vrcp.f32 %v89_v61  ;;  %vm97_vm9 = vmor %vm95_vm8, %vm96_vm7  ;;  %v116_v12 = vand.u32 2147483648, %v89_v61  ;;  %v114_v16 = vand.u32 2147483647, %v89_v61  ;;  %vm110_vm12 = vweird.f32 %v89_v61 }
 0x114   :  { %v92_v63 = vsub.f32 1.0, %v91_v62 }
 0x115   :  { %v117_v18 = vor.u32 1.1754944e-38, %v116_v12  ;;  %vm115_vm14 = vcmp.eq.f32.partialorder %v114_v16, 8.507059e+37 }
 0x116   :  { %v93_v1 = vmul.f32 %v189_v60, %v92_v63 }
 0x118   :  { %v94_v3 = vadd.f32 %v189_v60, %v93_v1 }
 0x119   :  { %v191_v4 = vpop.eup %190 }
 0x11a   :  { %v98_v6 = vsel %vm97_vm9, %v189_v60, %v94_v3  ;;  %v106_v8 = vmul.f32 %v191_v4, %v89_v61  ;;  %vm111_vm11 = vweird.f32 %v191_v4 }
 0x11b   :  { %v103_v9 = vsel %vm100_vm10, %v102_v5, %v98_v6  ;;  %vm112_vm13 = vmor %vm110_vm12, %vm111_vm11 }
 0x11c   :  { %v104_v10 = vmul.f32 %v103_v9, %v235_v15  ;;  %v107_v11 = vsub.f32 1.0, %v106_v8  ;;  %v179_v15 = vld [vmem:[%s272_s4] ss:$0 sm:$0xff] }
 0x11e   :  { %v123_v13 = vadd.f32 %v178_v7, %v104_v10  ;;  %v108_v14 = vmul.f32 %v191_v4, %v107_v11 }
 0x120   :  { %169 = vmatmul.msk.f32.vlgmr.msra.gmra.mxu0 %vm24_vm0, %v123_v13  ;;  %v109_v17 = vadd.f32 %v191_v4, %v108_v14 }
 0x122   :  { %v113_v19 = vsel %vm112_vm13, %v191_v4, %v109_v17 }
 0x123   :  { %v118_v20 = vsel %vm115_vm14, %v117_v18, %v113_v19 }
 0x124   :  { %v119_v22 = vmul.f32 %v118_v20, %v238_v21 }
 0x126   :  { %v124_v23 = vadd.f32 %v178_v7, %v119_v22 }
 0x128   :  { %170 = vmatmul.msk.f32.vlgmr.msra.gmra.mxu1 %vm24_vm0, %v124_v23 }
 0x19d   :  { %v156_v24 = vpop.f32.mrf.mxu0 }
 0x19e   :  { %v157_v25 = vadd.f32 %v179_v15, %v156_v24 }
 0x1a0   :  { %163 = vst.msk [vmem:[%s274_s5] sm:$0xff] %vm162_vm15, %v157_v25 }
 0x1a5   :  { %v159_v26 = vpop.f32.mrf.mxu1 }
 0x1a6   :  { %v160_v27 = vadd.f32 %v179_v15, %v159_v26 }
 0x1a8   :  { %164 = vst.msk [vmem:[%s274_s5 + $0x8] sm:$0xff] %vm162_vm15, %v160_v27 }

// kernel: punc_transformer_fwd.35
= control target key start
LH: loop header
LB: loop body
LE: loop exit
PB: predicated region body
PF: predicated region fallthrough
CT: control target
= control target key end

     0   :  { %vm18_vm0 = vcmask 261120   ;;  %v141_v4 = vmov 32.0   ;;  %v142_v24 = vmov 31.0   ;;  %s193_s0 = inlined_call_operand.vmem [shape: f32[16,32], index: 0, kind: input, shape index: {}]   ;;  %s194_s1 = inlined_call_operand.vmem [shape: f32[1,32], index: 1, kind: input, shape index: {}]   ;;  %s195_s2 = inlined_call_operand.vmem [shape: f32[1,32], index: 2, kind: input, shape index: {}]   ;;  %s196_s3 = inlined_call_operand.vmem [shape: f32[16,32], index: 3, kind: output, shape index: {}]  }
   0x1   :  { %v14_v0 = vld [vmem:[%s193_s0] sm:$0xff]  ;;  %v15_v2 = vld [vmem:[%s193_s0 + $0x8] sm:$0xff]  ;;  %129 = vrcp.f32 %v141_v4 }
   0x2   :  { %v19_v1 = vsel %vm18_vm0, %v14_v0, 0.0  ;;  %v22_v3 = vsel %vm18_vm0, %v15_v2, 0.0  ;;  %v127_v12 = vld [vmem:[%s194_s1] ss:$0 sm:$0xff]  ;;  %131 = vrcp.f32 %v142_v24 }
   0x3   :  { %20 = vadd.xlane.f32.xlu0 %v19_v1 }
   0x7   :  { %v130_v5 = vpop.eup %129 }
   0x8   :  { %v26_v6 = vmul.f32 32.0, %v130_v5  ;;  %vm30_vm1 = vweird.f32 %v130_v5  ;;  %v132_v25 = vpop.eup %131 }
   0x9   :  { %v45_v26 = vmul.f32 31.0, %v132_v25  ;;  %vm49_vm2 = vweird.f32 %v132_v25 }
   0xa   :  { %v27_v7 = vsub.f32 1.0, %v26_v6 }
   0xb   :  { %23 = vadd.xlane.f32.xlu0 %v22_v3  ;;  %v46_v27 = vsub.f32 1.0, %v45_v26 }
   0xc   :  { %v28_v8 = vmul.f32 %v130_v5, %v27_v7 }
   0xd   :  { %v47_v28 = vmul.f32 %v132_v25, %v46_v27 }
   0xe   :  { %v29_v9 = vadd.f32 %v130_v5, %v28_v8 }
   0xf   :  { %v48_v29 = vadd.f32 %v132_v25, %v47_v28 }
  0x10   :  { %v31_v10 = vsel %vm30_vm1, %v130_v5, %v29_v9 }
  0x11   :  { %v50_v30 = vsel %vm49_vm2, %v132_v25, %v48_v29 }
  0x76   :  { %v21_v11 = vpop.xlane.xlu0 %20 }
  0x77   :  { %v32_v13 = vmul.f32 %v31_v10, %v21_v11 }
  0x79   :  { %v34_v14 = vsub.f32 %v14_v0, %v32_v13 }
  0x7b   :  { %v174_v15 = vmul.f32 %v127_v12, %v34_v14  ;;  %v36_v16 = vmul.f32 %v34_v14, %v34_v14 }
  0x7d   :  { %v38_v17 = vsel %vm18_vm0, %v36_v16, 0.0 }
  0x7e   :  { %39 = vadd.xlane.f32.xlu1 %v38_v17  ;;  %v24_v18 = vpop.xlane.xlu0 %23 }
  0x7f   :  { %v33_v19 = vmul.f32 %v31_v10, %v24_v18 }
  0x81   :  { %v35_v20 = vsub.f32 %v15_v2, %v33_v19  ;;  %v128_v2 = vld [vmem:[%s195_s2] ss:$0 sm:$0xff] }
  0x83   :  { %v177_v21 = vmul.f32 %v127_v12, %v35_v20  ;;  %v37_v22 = vmul.f32 %v35_v20, %v35_v20 }
  0x85   :  { %v41_v23 = vsel %vm18_vm0, %v37_v22, 0.0 }
  0x86   :  { %42 = vadd.xlane.f32.xlu1 %v41_v23 }
  0xf1   :  { %v40_v31 = vpop.xlane.xlu1 %39 }
  0xf2   :  { %v51_v32 = vmul.f32 %v50_v30, %v40_v31 }
  0xf4   :  { %133 = vrsqrt.f32 %v51_v32  ;;  %vm60_vm3 = vcmp.eq.f32.partialorder %v51_v32, inf  ;;  %v63_v45 = vand.u32 2147483648, %v51_v32  ;;  %vm62_vm4 = vcmp.eq.f32.partialorder %v51_v32, 0.0 }
  0xf9   :  { %v43_v33 = vpop.xlane.xlu1 %42 }
  0xfa   :  { %v134_v34 = vpop.eup %133  ;;  %v52_v35 = vmul.f32 %v50_v30, %v43_v33 }
  0xfb   :  { %v54_v36 = vmul.f32 %v134_v34, %v51_v32 }
  0xfc   :  { %135 = vrsqrt.f32 %v52_v35  ;;  %vm72_vm5 = vcmp.eq.f32.partialorder %v52_v35, inf  ;;  %v75_v53 = vand.u32 2147483648, %v52_v35  ;;  %vm74_vm6 = vcmp.eq.f32.partialorder %v52_v35, 0.0 }
  0xfd   :  { %v55_v37 = vmul.f32 %v134_v34, %v54_v36 }
  0xff   :  { %v56_v38 = vmul.f32 0.5, %v55_v37 }
 0x101   :  { %v57_v39 = vsub.f32 1.5, %v56_v38 }
 0x102   :  { %v136_v40 = vpop.eup %135 }
 0x103   :  { %v58_v41 = vmul.f32 %v134_v34, %v57_v39  ;;  %v66_v42 = vmul.f32 %v136_v40, %v52_v35 }
 0x105   :  { %v59_v43 = vmul.f32 %v58_v41, %v51_v32  ;;  %v67_v44 = vmul.f32 %v136_v40, %v66_v42 }
 0x107   :  { %v61_v46 = vsel %vm60_vm3, %v51_v32, %v59_v43  ;;  %v68_v47 = vmul.f32 0.5, %v67_v44 }
 0x108   :  { %v64_v48 = vsel %vm62_vm4, %v63_v45, %v61_v46 }
 0x109   :  { %v82_v49 = vadd.f32 1e-07, %v64_v48  ;;  %v69_v50 = vsub.f32 1.5, %v68_v47 }
 0x10b   :  { %137 = vrcp.f32 %v82_v49  ;;  %v70_v51 = vmul.f32 %v136_v40, %v69_v50  ;;  %v95_v60 = vand.u32 2147483648, %v82_v49  ;;  %v93_v62 = vand.u32 2147483647, %v82_v49 }
 0x10c   :  { %vm89_vm8 = vweird.f32 %v82_v49 }
 0x10d   :  { %v71_v52 = vmul.f32 %v70_v51, %v52_v35  ;;  %v96_v0 = vor.u32 1.1754944e-38, %v95_v60  ;;  %vm94_vm10 = vcmp.eq.f32.partialorder %v93_v62, 8.507059e+37 }
 0x10f   :  { %v73_v54 = vsel %vm72_vm5, %v52_v35, %v71_v52 }
 0x110   :  { %v76_v56 = vsel %vm74_vm6, %v75_v53, %v73_v54 }
 0x111   :  { %v138_v55 = vpop.eup %137  ;;  %v83_v58 = vadd.f32 1e-07, %v76_v56 }
 0x112   :  { %v85_v57 = vmul.f32 %v138_v55, %v82_v49  ;;  %vm90_vm7 = vweird.f32 %v138_v55 }
 0x113   :  { %139 = vrcp.f32 %v83_v58  ;;  %vm91_vm9 = vmor %vm89_vm8, %vm90_vm7  ;;  %v110_v9 = vand.u32 2147483648, %v83_v58  ;;  %v108_v11 = vand.u32 2147483647, %v83_v58  ;;  %vm104_vm12 = vweird.f32 %v83_v58 }
 0x114   :  { %v86_v59 = vsub.f32 1.0, %v85_v57 }
 0x115   :  { %v111_v13 = vor.u32 1.1754944e-38, %v110_v9  ;;  %vm109_vm14 = vcmp.eq.f32.partialorder %v108_v11, 8.507059e+37 }
 0x116   :  { %v87_v61 = vmul.f32 %v138_v55, %v86_v59 }
 0x118   :  { %v88_v63 = vadd.f32 %v138_v55, %v87_v61 }
 0x119   :  { %v140_v1 = vpop.eup %139 }
 0x11a   :  { %v92_v3 = vsel %vm91_vm9, %v138_v55, %v88_v63  ;;  %v100_v5 = vmul.f32 %v140_v1, %v83_v58  ;;  %vm105_vm11 = vweird.f32 %v140_v1 }
 0x11b   :  { %v97_v4 = vsel %vm94_vm10, %v96_v0, %v92_v3  ;;  %vm106_vm13 = vmor %vm104_vm12, %vm105_vm11 }
 0x11c   :  { %v98_v6 = vmul.f32 %v97_v4, %v174_v15  ;;  %v101_v7 = vsub.f32 1.0, %v100_v5 }
 0x11e   :  { %v117_v8 = vadd.f32 %v128_v2, %v98_v6  ;;  %v102_v10 = vmul.f32 %v140_v1, %v101_v7 }
 0x120   :  { %119 = vst.msk [vmem:[%s196_s3] sm:$0xff] %vm18_vm0, %v117_v8  ;;  %v103_v12 = vadd.f32 %v140_v1, %v102_v10 }
 0x122   :  { %v107_v14 = vsel %vm106_vm13, %v140_v1, %v103_v12 }
 0x123   :  { %v112_v16 = vsel %vm109_vm14, %v111_v13, %v107_v14 }
 0x124   :  { %v113_v15 = vmul.f32 %v112_v16, %v177_v21 }
 0x126   :  { %v118_v17 = vadd.f32 %v128_v2, %v113_v15 }
 0x128   :  { %120 = vst.msk [vmem:[%s196_s3 + $0x8] sm:$0xff] %vm18_vm0, %v118_v17 }

// kernel: punc_transformer_fwd.31
= control target key start
LH: loop header
LB: loop body
LE: loop exit
PB: predicated region body
PF: predicated region fallthrough
CT: control target
= control target key end

     0   :  { %vm43_vm0 = vcmask 261120   ;;  %v307_v17 = vmov 32.0   ;;  %v308_v34 = vmov 31.0   ;;  %vm230_vm15 = vcmask 523264   ;;  %s475_s2 = inlined_call_operand.vmem [shape: f32[32,32], index: 2, kind: input, shape index: {}]   ;;  %s476_s3 = inlined_call_operand.vmem [shape: f32[1,32], index: 3, kind: input, shape index: {}]   ;;  %s477_s0 = inlined_call_operand.vmem [shape: f32[16,32], index: 0, kind: input, shape index: {}]   ;;  %s478_s4 = inlined_call_operand.vmem [shape: f32[1,32], index: 4, kind: input, shape index: {}]   ;;  %s479_s1 = inlined_call_operand.vmem [shape: f32[16,32], index: 1, kind: input, shape index: {}]   ;;  %s480_s5 = inlined_call_operand.vmem [shape: f32[1,32], index: 5, kind: input, shape index: {}]   ;;  %s481_s7 = inlined_call_operand.vmem [shape: f32[1,64], index: 7, kind: input, shape index: {}]   ;;  %s482_s6 = inlined_call_operand.vmem [shape: f32[32,64], index: 6, kind: input, shape index: {}]   ;;  %s483_s8 = inlined_call_operand.vmem [shape: f32[64,32], index: 8, kind: input, shape index: {}]   ;;  %s484_s9 = inlined_call_operand.vmem [shape: f32[1,32], index: 9, kind: input, shape index: {}]   ;;  %s485_s10 = inlined_call_operand.vmem [shape: f32[16,32], index: 10, kind: output, shape index: {}]  }
   0x1   :  { %v42_v0 = vld [vmem:[%s475_s2 + $0x18] sm:$0xff]  ;;  %v41_v1 = vld [vmem:[%s475_s2 + $0x10] sm:$0xff]  ;;  %v40_v2 = vld [vmem:[%s475_s2 + $0x8] sm:$0xff]  ;;  %295 = vrcp.f32 %v307_v17 }
   0x2   :  { %62 = vmatpush.msra.mxu0 %v42_v0  ;;  %v39_v3 = vld [vmem:[%s475_s2] sm:$0xff]  ;;  %v38_v5 = vld [vmem:[%s477_s0 + $0x8] sm:$0xff]  ;;  %297 = vrcp.f32 %v308_v34  ;;  %v186_v40 = vld [vmem:[%s482_s6 + $0x18] sm:$0xff] }
   0x3   :  { %v37_v4 = vld [vmem:[%s477_s0] sm:$0xff]  ;;  %v36_v12 = vld [vmem:[%s479_s1 + $0x8] sm:$0xff]  ;;  %v185_v41 = vld [vmem:[%s482_s6 + $0x10] sm:$0xff]  ;;  %209 = vmatpush.msra.mxu1 %v186_v40 }
   0x4   :  { %63 = vmatpush.msra.mxu0 %v41_v1  ;;  %v35_v6 = vld [vmem:[%s479_s1] sm:$0xff]  ;;  %v184_v43 = vld [vmem:[%s482_s6 + $0x8] sm:$0xff]  ;;  %v229_v63 = vld [vmem:[%s483_s8 + $0x38] sm:$0xff] }
   0x5   :  { %v290_v7 = vld [vmem:[%s476_s3] ss:$0 sm:$0xff]  ;;  %210 = vmatpush.msra.mxu1 %v185_v41  ;;  %v228_v0 = vld [vmem:[%s483_s8 + $0x30] sm:$0xff]  ;;  %245 = vmatpush.msra.mxu2 %v229_v63 }
   0x6   :  { %64 = vmatpush.msra.mxu0 %v40_v2  ;;  %v183_v45 = vld [vmem:[%s482_s6] sm:$0xff]  ;;  %280 = vmatpush.msra.mxu3 %v229_v63 }
   0x7   :  { %v296_v18 = vpop.eup %295  ;;  %211 = vmatpush.msra.mxu1 %v184_v43  ;;  %246 = vmatpush.msra.mxu2 %v228_v0  ;;  %v224_v43 = vld [vmem:[%s483_s8 + $0x10] sm:$0xff] }
   0x8   :  { %65 = vmatpush.msra.mxu0 %v39_v3  ;;  %v90_v19 = vmul.f32 32.0, %v296_v18  ;;  %vm94_vm1 = vweird.f32 %v296_v18  ;;  %v298_v35 = vpop.eup %297  ;;  %v227_v3 = vld [vmem:[%s483_s8 + $0x28] sm:$0xff]  ;;  %281 = vmatpush.msra.mxu3 %v228_v0 }
   0x9   :  { %274 = vmatmul.msk.f32.vlgmr.msra.gmra.mxu0 %vm43_vm0, %v37_v4  ;;  %v109_v36 = vmul.f32 31.0, %v298_v35  ;;  %vm113_vm2 = vweird.f32 %v298_v35  ;;  %212 = vmatpush.msra.mxu1 %v183_v45  ;;  %v293_v45 = vld [vmem:[%s481_s7] ss:$0 sm:$0xff] }
   0xa   :  { %v91_v20 = vsub.f32 1.0, %v90_v19  ;;  %247 = vmatpush.msra.mxu2 %v227_v3  ;;  %282 = vmatpush.msra.mxu3 %v227_v3 }
   0xb   :  { %v110_v37 = vsub.f32 1.0, %v109_v36 }
   0xc   :  { %v92_v21 = vmul.f32 %v296_v18, %v91_v20 }
   0xd   :  { %v111_v38 = vmul.f32 %v298_v35, %v110_v37 }
   0xe   :  { %v93_v22 = vadd.f32 %v296_v18, %v92_v21 }
   0xf   :  { %v112_v39 = vadd.f32 %v298_v35, %v111_v38 }
  0x10   :  { %v95_v23 = vsel %vm94_vm1, %v296_v18, %v93_v22  ;;  %v291_v18 = vld [vmem:[%s478_s4] ss:$0 sm:$0xff] }
  0x11   :  { %275 = vmatmul.msk.f32.gmra.mxu0 %vm43_vm0, %v38_v5  ;;  %v114_v42 = vsel %vm113_vm2, %v298_v35, %v112_v39  ;;  %v226_v5 = vld [vmem:[%s483_s8 + $0x20] sm:$0xff] }
  0x12   :  { %248 = vmatpush.msra.mxu2 %v226_v5  ;;  %283 = vmatpush.msra.mxu3 %v226_v5 }
  0x86   :  { %v67_v8 = vpop.f32.mrf.mxu0 }
  0x87   :  { %v73_v9 = vadd.f32 %v67_v8, %v35_v6  ;;  %v225_v8 = vld [vmem:[%s483_s8 + $0x18] sm:$0xff] }
  0x88   :  { %249 = vmatpush.msra.mxu2 %v225_v8  ;;  %284 = vmatpush.msra.mxu3 %v225_v8 }
  0x89   :  { %v390_v10 = vadd.f32 %v290_v7, %v73_v9 }
  0x8a   :  { %250 = vmatpush.msra.mxu2 %v224_v43  ;;  %285 = vmatpush.msra.mxu3 %v224_v43 }
  0x8b   :  { %v83_v11 = vsel %vm43_vm0, %v390_v10, 0.0 }
  0x8c   :  { %84 = vadd.xlane.f32.xlu0 %v83_v11 }
  0x8e   :  { %v70_v13 = vpop.f32.mrf.mxu0 }
  0x8f   :  { %v74_v14 = vadd.f32 %v70_v13, %v36_v12 }
  0x91   :  { %v397_v15 = vadd.f32 %v290_v7, %v74_v14 }
  0x93   :  { %v86_v16 = vsel %vm43_vm0, %v397_v15, 0.0 }
  0x94   :  { %87 = vadd.xlane.f32.xlu0 %v86_v16 }
  0xff   :  { %v85_v24 = vpop.xlane.xlu0 %84 }
 0x100   :  { %v96_v25 = vmul.f32 %v95_v23, %v85_v24 }
 0x102   :  { %v402_v26 = vsub.f32 %v390_v10, %v96_v25 }
 0x104   :  { %v100_v27 = vmul.f32 %v402_v26, %v402_v26  ;;  %v144_v24 = vmul.f32 %v291_v18, %v402_v26 }
 0x106   :  { %v102_v28 = vsel %vm43_vm0, %v100_v27, 0.0  ;;  %v292_v27 = vld [vmem:[%s480_s5] ss:$0 sm:$0xff] }
 0x107   :  { %103 = vadd.xlane.f32.xlu1 %v102_v28  ;;  %v88_v29 = vpop.xlane.xlu0 %87 }
 0x108   :  { %v97_v30 = vmul.f32 %v95_v23, %v88_v29 }
 0x10a   :  { %v408_v31 = vsub.f32 %v397_v15, %v97_v30 }
 0x10c   :  { %v101_v32 = vmul.f32 %v408_v31, %v408_v31  ;;  %v145_v38 = vmul.f32 %v291_v18, %v408_v31  ;;  %v222_v31 = vld [vmem:[%s483_s8] sm:$0xff] }
 0x10e   :  { %v105_v33 = vsel %vm43_vm0, %v101_v32, 0.0 }
 0x10f   :  { %106 = vadd.xlane.f32.xlu1 %v105_v33 }
 0x17a   :  { %v104_v44 = vpop.xlane.xlu1 %103 }
 0x17b   :  { %v115_v46 = vmul.f32 %v114_v42, %v104_v44  ;;  %v223_v44 = vld [vmem:[%s483_s8 + $0x8] sm:$0xff] }
 0x17c   :  { %251 = vmatpush.msra.mxu2 %v223_v44  ;;  %286 = vmatpush.msra.mxu3 %v223_v44 }
 0x17d   :  { %299 = vrsqrt.f32 %v115_v46  ;;  %vm124_vm3 = vcmp.eq.f32.partialorder %v115_v46, inf  ;;  %v127_v59 = vand.u32 2147483648, %v115_v46  ;;  %vm126_vm4 = vcmp.eq.f32.partialorder %v115_v46, 0.0 }
 0x17e   :  { %252 = vmatpush.msra.mxu2 %v222_v31  ;;  %287 = vmatpush.msra.mxu3 %v222_v31 }
 0x182   :  { %v107_v47 = vpop.xlane.xlu1 %106 }
 0x183   :  { %v300_v48 = vpop.eup %299  ;;  %v116_v49 = vmul.f32 %v114_v42, %v107_v47 }
 0x184   :  { %v118_v50 = vmul.f32 %v300_v48, %v115_v46 }
 0x185   :  { %301 = vrsqrt.f32 %v116_v49  ;;  %vm136_vm5 = vcmp.eq.f32.partialorder %v116_v49, inf  ;;  %v139_v7 = vand.u32 2147483648, %v116_v49  ;;  %vm138_vm6 = vcmp.eq.f32.partialorder %v116_v49, 0.0 }
 0x186   :  { %v119_v51 = vmul.f32 %v300_v48, %v118_v50 }
 0x188   :  { %v120_v52 = vmul.f32 0.5, %v119_v51 }
 0x18a   :  { %v121_v53 = vsub.f32 1.5, %v120_v52  ;;  %v294_v52 = vld [vmem:[%s484_s9] ss:$0 sm:$0xff] }
 0x18b   :  { %v302_v54 = vpop.eup %301 }
 0x18c   :  { %v122_v55 = vmul.f32 %v300_v48, %v121_v53  ;;  %v130_v56 = vmul.f32 %v302_v54, %v116_v49 }
 0x18e   :  { %v123_v57 = vmul.f32 %v122_v55, %v115_v46  ;;  %v131_v58 = vmul.f32 %v302_v54, %v130_v56 }
 0x190   :  { %v132_v60 = vmul.f32 0.5, %v131_v58  ;;  %v125_v61 = vsel %vm124_vm3, %v115_v46, %v123_v57 }
 0x191   :  { %v128_v62 = vsel %vm126_vm4, %v127_v59, %v125_v61 }
 0x192   :  { %v133_v1 = vsub.f32 1.5, %v132_v60  ;;  %v146_v2 = vadd.f32 1e-07, %v128_v62 }
 0x194   :  { %v134_v4 = vmul.f32 %v302_v54, %v133_v1  ;;  %303 = vrcp.f32 %v146_v2  ;;  %v159_v17 = vand.u32 2147483648, %v146_v2  ;;  %v157_v20 = vand.u32 2147483647, %v146_v2 }
 0x195   :  { %vm153_vm8 = vweird.f32 %v146_v2 }
 0x196   :  { %v135_v6 = vmul.f32 %v134_v4, %v116_v49  ;;  %v160_v23 = vor.u32 1.1754944e-38, %v159_v17  ;;  %vm158_vm10 = vcmp.eq.f32.partialorder %v157_v20, 8.507059e+37 }
 0x198   :  { %v137_v9 = vsel %vm136_vm5, %v116_v49, %v135_v6 }
 0x199   :  { %v140_v11 = vsel %vm138_vm6, %v139_v7, %v137_v9 }
 0x19a   :  { %v304_v12 = vpop.eup %303  ;;  %v147_v13 = vadd.f32 1e-07, %v140_v11 }
 0x19b   :  { %v149_v14 = vmul.f32 %v304_v12, %v146_v2  ;;  %vm154_vm7 = vweird.f32 %v304_v12 }
 0x19c   :  { %305 = vrcp.f32 %v147_v13  ;;  %vm155_vm9 = vmor %vm153_vm8, %vm154_vm7  ;;  %v174_v33 = vand.u32 2147483648, %v147_v13  ;;  %v172_v36 = vand.u32 2147483647, %v147_v13  ;;  %vm168_vm12 = vweird.f32 %v147_v13 }
 0x19d   :  { %v150_v16 = vsub.f32 1.0, %v149_v14 }
 0x19e   :  { %v175_v26 = vor.u32 1.1754944e-38, %v174_v33  ;;  %vm173_vm14 = vcmp.eq.f32.partialorder %v172_v36, 8.507059e+37 }
 0x19f   :  { %v151_v19 = vmul.f32 %v304_v12, %v150_v16 }
 0x1a1   :  { %v152_v21 = vadd.f32 %v304_v12, %v151_v19 }
 0x1a2   :  { %v306_v22 = vpop.eup %305 }
 0x1a3   :  { %v156_v25 = vsel %vm155_vm9, %v304_v12, %v152_v21  ;;  %v164_v28 = vmul.f32 %v306_v22, %v147_v13  ;;  %vm169_vm11 = vweird.f32 %v306_v22 }
 0x1a4   :  { %v161_v29 = vsel %vm158_vm10, %v160_v23, %v156_v25  ;;  %vm170_vm13 = vmor %vm168_vm12, %vm169_vm11 }
 0x1a5   :  { %v162_v30 = vmul.f32 %v161_v29, %v144_v24  ;;  %v165_v32 = vsub.f32 1.0, %v164_v28 }
 0x1a7   :  { %v181_v34 = vadd.f32 %v292_v27, %v162_v30  ;;  %v166_v35 = vmul.f32 %v306_v22, %v165_v32 }
 0x1a9   :  { %276 = vmatmul.msk.f32.vlgmr.msra.gmra.mxu1 %vm43_vm0, %v181_v34  ;;  %v167_v37 = vadd.f32 %v306_v22, %v166_v35 }
 0x1ab   :  { %v171_v39 = vsel %vm170_vm13, %v306_v22, %v167_v37 }
 0x1ac   :  { %v176_v40 = vsel %vm173_vm14, %v175_v26, %v171_v39 }
 0x1ad   :  { %v177_v41 = vmul.f32 %v176_v40, %v145_v38 }
 0x1af   :  { %v182_v42 = vadd.f32 %v292_v27, %v177_v41 }
 0x1b1   :  { %277 = vmatmul.msk.f32.gmra.mxu1 %vm43_vm0, %v182_v42 }
 0x226   :  { %v214_v46 = vpop.f32.mrf.mxu1 }
 0x227   :  { %v215_v47 = vadd.f32 %v293_v45, %v214_v46 }
 0x229   :  { %v220_v48 = vmax.f32 %v215_v47, 0.0 }
 0x22b   :  { %278 = vmatmul.msk.f32.vlgmr.msra.gmra.mxu2 %vm230_vm15, %v220_v48 }
 0x22e   :  { %v217_v49 = vpop.f32.mrf.mxu1 }
 0x22f   :  { %v218_v50 = vadd.f32 %v293_v45, %v217_v49 }
 0x231   :  { %v221_v51 = vmax.f32 %v218_v50, 0.0 }
 0x233   :  { %279 = vmatmul.msk.f32.vlgmr.msra.gmra.mxu3 %vm230_vm15, %v221_v51 }
 0x2ae   :  { %v254_v53 = vpop.f32.mrf.mxu2 }
 0x2af   :  { %v260_v54 = vadd.f32 %v254_v53, %v390_v10 }
 0x2b1   :  { %v266_v55 = vadd.f32 %v294_v52, %v260_v54 }
 0x2b3   :  { %268 = vst.msk [vmem:[%s485_s10] sm:$0xff] %vm43_vm0, %v266_v55 }
 0x2b6   :  { %v257_v56 = vpop.f32.mrf.mxu3 }
 0x2b7   :  { %v261_v57 = vadd.f32 %v257_v56, %v397_v15 }
 0x2b9   :  { %v267_v58 = vadd.f32 %v294_v52, %v261_v57 }
 0x2bb   :  { %269 = vst.msk [vmem:[%s485_s10 + $0x8] sm:$0xff] %vm43_vm0, %v267_v58 }

// kernel: punc_transformer_fwd.48
= control target key start
LH: loop header
LB: loop body
LE: loop exit
PB: predicated region body
PF: predicated region fallthrough
CT: control target
= control target key end

     0   :  { %s704_s15 = smov 0   ;;  %s764_s0 = inlined_call_operand.vmem [shape: f32[2,4,8,8], index: 0, kind: input, shape index: {}]   ;;  %s765_s1 = inlined_call_operand.vmem [shape: f32[2,4,8,8], index: 1, kind: input, shape index: {}]   ;;  %s766_s2 = inlined_call_operand.vmem [shape: f32[2,4,8,8], index: 2, kind: input, shape index: {}]   ;;  %s767_s3 = inlined_call_operand.vmem [shape: s32[2,8,8], index: 3, kind: input, shape index: {}]   ;;  %s768_s4 = inlined_call_operand.vmem [shape: f32[2,4,8,8], index: 4, kind: output, shape index: {}]  }
   0x1 LB: > { %s615_s16 = sadd.s32 4294967295, %s677_s15   ;;  %p619_p0 = scmp.ge.s32.totalorder %s677_s15, 1  ;;  %s677_s15 = sphi %s704_s15, %s14_s15  }
   0x2   : > { %p191_p1 = scmp.lt.s32.totalorder %s677_s15, 3 }
   0x4   : > { %p192_p2 = pnand %p619_p0, %p191_p1 }
   0x5   : > { %p231_p3 = scmp.lt.s32.totalorder (!%p192_p2), %s615_s16, 1 }
   0x6   : > { %195 = sbr.rel (%p192_p2) target bundleno = 548 (0x224), region = 36 }
   0xb   : > { %s770_s16 = smov (!%p231_p3, %s615_s16), 1  ;;  %vm268_vm0 = vcmask 64512  }
   0xc   : > { %s712_s17 = sshll.u32 %s770_s16, 5  ;;  %s626_s24 = sshll.u32 %s770_s16, 3 }
   0xd   : > { %s240_s20 = scalar_lea.vmem %s765_s1, %s712_s17  ;;  %s235_s23 = scalar_lea.vmem %s764_s0, %s712_s17 }
   0xe   : > { %v259_v0 = vld [vmem:[%s240_s20] sm:$0xff]  ;;  %v261_v1 = vld [vmem:[%s240_s20 + $0x10] sm:$0xff]  ;;  %v260_v4 = vld [vmem:[%s240_s20 + $0x8] sm:$0xff]  ;;  %s249_s27 = scalar_lea.vmem %s767_s3, %s626_s24  ;;  %s245_s30 = scalar_lea.vmem %s766_s2, %s712_s17 }
   0xf   : > { %v255_v2 = vld [vmem:[%s235_s23] sm:$0xff]  ;;  %629 = vmatpush.xpose.msk.msra.mxu0 %vm268_vm0, %v259_v0  ;;  %633 = vmatpush.xpose.msk.msra.mxu2 %vm268_vm0, %v261_v1  ;;  %v257_v3 = vld [vmem:[%s235_s23 + $0x10] sm:$0xff]  ;;  %v262_v5 = vld [vmem:[%s240_s20 + $0x18] sm:$0xff]  ;;  %s254_s7 = scalar_lea.vmem %s768_s4, %s712_s17 }
  0x10   : > { %631 = vmatpush.xpose.msk.msra.mxu1 %vm268_vm0, %v260_v4  ;;  %635 = vmatpush.xpose.msk.msra.mxu3 %vm268_vm0, %v262_v5  ;;  %v256_v6 = vld [vmem:[%s235_s23 + $0x8] sm:$0xff]  ;;  %v258_v7 = vld [vmem:[%s235_s23 + $0x18] sm:$0xff]  ;;  %v267_v8 = vld [vmem:[%s249_s27] sm:$0xff] }
  0x11   : > { %vm377_vm1 = vcmp.eq.s32.totalorder %v267_v8, 0  ;;  %v263_v45 = vld [vmem:[%s245_s30] sm:$0xff]  ;;  %v265_v46 = vld [vmem:[%s245_s30 + $0x10] sm:$0xff]  ;;  %v264_v47 = vld [vmem:[%s245_s30 + $0x8] sm:$0xff] }
  0x12   : > { %630 = vmatmul.msk.f32.vlgmr.msra.gmra.mxu0 %vm268_vm0, %v255_v2  ;;  %634 = vmatmul.msk.f32.vlgmr.msra.gmra.mxu2 %vm268_vm0, %v257_v3  ;;  %v266_v48 = vld [vmem:[%s245_s30 + $0x18] sm:$0xff] }
  0x13   : > { %632 = vmatmul.msk.f32.vlgmr.msra.gmra.mxu1 %vm268_vm0, %v256_v6  ;;  %636 = vmatmul.msk.f32.vlgmr.msra.gmra.mxu3 %vm268_vm0, %v258_v7 }
  0x14   : > { %446 = vmatpush.msrb.mxu0 %v263_v45  ;;  %492 = vmatpush.msrb.mxu2 %v265_v46 }
  0x15   : > { %469 = vmatpush.msrb.mxu1 %v264_v47  ;;  %515 = vmatpush.msrb.mxu3 %v266_v48 }
  0x8f   : > { %v292_v9 = vpop.f32.mrf.mxu0 }
  0x90   : > { %v373_v10 = vmul.f32 0.35355338, %v292_v9  ;;  %v318_v11 = vpop.f32.mrf.mxu1 }
  0x91   : > { %v374_v13 = vmul.f32 0.35355338, %v318_v11 }
  0x92   : > { %v380_v12 = vsel %vm377_vm1, -1e+09, %v373_v10 }
  0x93   : > { %v384_v14 = vsel %vm268_vm0, %v380_v12, -inf  ;;  %v381_v17 = vsel %vm377_vm1, -1e+09, %v374_v13 }
  0x94   : > { %385 = vmax.xlane.f32.xlu1 %v384_v14  ;;  %v387_v22 = vsel %vm268_vm0, %v381_v17, -inf }
  0x95   : > { %v344_v15 = vpop.f32.mrf.mxu2 }
  0x96   : > { %v375_v16 = vmul.f32 0.35355338, %v344_v15  ;;  %v370_v18 = vpop.f32.mrf.mxu3 }
  0x97   : > { %v376_v20 = vmul.f32 0.35355338, %v370_v18 }
  0x98   : > { %v382_v19 = vsel %vm377_vm1, -1e+09, %v375_v16 }
  0x99   : > { %v390_v21 = vsel %vm268_vm0, %v382_v19, -inf  ;;  %v383_v23 = vsel %vm377_vm1, -1e+09, %v376_v20 }
  0x9a   : > { %391 = vmax.xlane.f32.xlu0 %v390_v21  ;;  %v393_v24 = vsel %vm268_vm0, %v383_v23, -inf }
  0x9c   : > { %388 = vmax.xlane.f32.xlu1 %v387_v22 }
  0xa2   : > { %394 = vmax.xlane.f32.xlu0 %v393_v24 }
 0x107   : > { %v386_v25 = vpop.xlane.xlu1 %385 }
 0x108   : > { %v396_v26 = vsub.f32 %v380_v12, %v386_v25 }
 0x10a   : > { %v400_v27 = vmul.f32 1.442695, %v396_v26 }
 0x10c   : > { %655 = vpow2.f32 %v400_v27 }
 0x10d   : > { %v392_v28 = vpop.xlane.xlu0 %391 }
 0x10e   : > { %v398_v29 = vsub.f32 %v382_v19, %v392_v28 }
 0x10f   : > { %v389_v30 = vpop.xlane.xlu1 %388 }
 0x110   : > { %v404_v31 = vmul.f32 1.442695, %v398_v29  ;;  %v397_v32 = vsub.f32 %v381_v17, %v389_v30 }
 0x112   : > { %v656_v33 = vpop.eup %655  ;;  %657 = vpow2.f32 %v404_v31  ;;  %v402_v34 = vmul.f32 1.442695, %v397_v32 }
 0x113   : > { %v408_v35 = vsel %vm268_vm0, %v656_v33, 0.0 }
 0x114   : > { %659 = vpow2.f32 %v402_v34  ;;  %409 = vadd.xlane.f32.xlu0 %v408_v35 }
 0x115   : > { %v395_v36 = vpop.xlane.xlu0 %394 }
 0x116   : > { %v399_v37 = vsub.f32 %v383_v23, %v395_v36 }
 0x118   : > { %v658_v38 = vpop.eup %657  ;;  %v406_v39 = vmul.f32 1.442695, %v399_v37 }
 0x119   : > { %v414_v40 = vsel %vm268_vm0, %v658_v38, 0.0 }
 0x11a   : > { %v660_v41 = vpop.eup %659  ;;  %661 = vpow2.f32 %v406_v39  ;;  %415 = vadd.xlane.f32.xlu2 %v414_v40 }
 0x11b   : > { %v411_v42 = vsel %vm268_vm0, %v660_v41, 0.0 }
 0x11c   : > { %412 = vadd.xlane.f32.xlu1 %v411_v42 }
 0x120   : > { %v662_v43 = vpop.eup %661 }
 0x121   : > { %v417_v44 = vsel %vm268_vm0, %v662_v43, 0.0 }
 0x122   : > { %418 = vadd.xlane.f32.xlu2 %v417_v44 }
 0x187   : > { %v410_v49 = vpop.xlane.xlu0 %409 }
 0x188   : > { %663 = vrcp.f32 %v410_v49 }
 0x18d   : > { %v416_v50 = vpop.xlane.xlu2 %415 }
 0x18e   : > { %v664_v51 = vpop.eup %663  ;;  %665 = vrcp.f32 %v416_v50 }
 0x18f   : > { %v424_v52 = vmul.f32 %v664_v51, %v656_v33  ;;  %v413_v53 = vpop.xlane.xlu1 %412 }
 0x190   : > { %667 = vrcp.f32 %v413_v53 }
 0x191   : > { %637 = vmatmul.msk.f32.vlgmr.msrb.gmra.mxu0 %vm268_vm0, %v424_v52 }
 0x194   : > { %v666_v54 = vpop.eup %665 }
 0x195   : > { %v419_v55 = vpop.xlane.xlu2 %418  ;;  %v426_v56 = vmul.f32 %v666_v54, %v658_v38 }
 0x196   : > { %v668_v57 = vpop.eup %667  ;;  %669 = vrcp.f32 %v419_v55 }
 0x197   : > { %v425_v58 = vmul.f32 %v668_v57, %v660_v41  ;;  %639 = vmatmul.msk.f32.vlgmr.msrb.gmra.mxu2 %vm268_vm0, %v426_v56 }
 0x199   : > { %638 = vmatmul.msk.f32.vlgmr.msrb.gmra.mxu1 %vm268_vm0, %v425_v58 }
 0x19c   : > { %v670_v59 = vpop.eup %669 }
 0x19d   : > { %v427_v60 = vmul.f32 %v670_v59, %v662_v43 }
 0x19f   : > { %640 = vmatmul.msk.f32.vlgmr.msrb.gmra.mxu3 %vm268_vm0, %v427_v60 }
 0x20e   : > { %v448_v61 = vpop.f32.mrf.mxu0 }
 0x20f   : > { %520 = vst.msk [vmem:[%s254_s7] sm:$0xff] %vm268_vm0, %v448_v61 }
 0x216   : > { %v471_v62 = vpop.f32.mrf.mxu1 }
 0x217   : > { %521 = vst.msk [vmem:[%s254_s7 + $0x8] sm:$0xff] %vm268_vm0, %v471_v62 }
 0x21a   : > { %v494_v63 = vpop.f32.mrf.mxu2 }
 0x21b   : > { %522 = vst.msk [vmem:[%s254_s7 + $0x10] sm:$0xff] %vm268_vm0, %v494_v63 }
 0x222   : > { %v517_v0 = vpop.f32.mrf.mxu3 }
 0x223   : > { %523 = vst.msk [vmem:[%s254_s7 + $0x18] sm:$0xff] %vm268_vm0, %v517_v0 }
 0x224 PF: > { %s14_s15 = sadd.s32 1, %s677_s15  }
 0x225   : > { %p11_p4 = scmp.ge.s32.totalorder %s14_s15, 4  }
 0x227   :  { %13 = sbr.rel (!%p11_p4) target bundleno = 1 (0x1), region = 75 }

// kernel: punc_transformer_fwd.57
= control target key start
LH: loop header
LB: loop body
LE: loop exit
PB: predicated region body
PF: predicated region fallthrough
CT: control target
= control target key end

     0   :  { %vm24_vm0 = vcmask 261120   ;;  %v191_v4 = vmov 32.0   ;;  %v192_v24 = vmov 31.0   ;;  %s268_s0 = inlined_call_operand.vmem [shape: f32[16,32], index: 0, kind: input, shape index: {}]   ;;  %s269_s1 = inlined_call_operand.vmem [shape: f32[1,32], index: 1, kind: input, shape index: {}]   ;;  %s270_s2 = inlined_call_operand.vmem [shape: f32[1,32], index: 2, kind: input, shape index: {}]   ;;  %s271_s4 = inlined_call_operand.vmem [shape: f32[1,128], index: 4, kind: input, shape index: {}]   ;;  %s272_s3 = inlined_call_operand.vmem [shape: f32[32,128], index: 3, kind: input, shape index: {}]   ;;  %s273_s5 = inlined_call_operand.vmem [shape: f32[16,128], index: 5, kind: output, shape index: {}]  }
   0x1   :  { %v20_v0 = vld [vmem:[%s268_s0] sm:$0xff]  ;;  %v21_v2 = vld [vmem:[%s268_s0 + $0x8] sm:$0xff]  ;;  %179 = vrcp.f32 %v191_v4  ;;  %v128_v30 = vld [vmem:[%s272_s3 + $0x18] sm:$0xff] }
   0x2   :  { %v25_v1 = vsel %vm24_vm0, %v20_v0, 0.0  ;;  %v28_v3 = vsel %vm24_vm0, %v21_v2, 0.0  ;;  %v176_v12 = vld [vmem:[%s269_s1] ss:$0 sm:$0xff]  ;;  %181 = vrcp.f32 %v192_v24  ;;  %v127_v31 = vld [vmem:[%s272_s3 + $0x10] sm:$0xff]  ;;  %151 = vmatpush.msra.mxu0 %v128_v30  ;;  %170 = vmatpush.msra.mxu1 %v128_v30  ;;  %v126_v33 = vld [vmem:[%s272_s3 + $0x8] sm:$0xff] }
   0x3   :  { %26 = vadd.xlane.f32.xlu0 %v25_v1  ;;  %v125_v35 = vld [vmem:[%s272_s3] sm:$0xff] }
   0x4   :  { %152 = vmatpush.msra.mxu0 %v127_v31  ;;  %171 = vmatpush.msra.mxu1 %v127_v31 }
   0x6   :  { %153 = vmatpush.msra.mxu0 %v126_v33  ;;  %172 = vmatpush.msra.mxu1 %v126_v33 }
   0x7   :  { %v180_v5 = vpop.eup %179 }
   0x8   :  { %v32_v6 = vmul.f32 32.0, %v180_v5  ;;  %vm36_vm1 = vweird.f32 %v180_v5  ;;  %v182_v25 = vpop.eup %181  ;;  %154 = vmatpush.msra.mxu0 %v125_v35  ;;  %173 = vmatpush.msra.mxu1 %v125_v35 }
   0x9   :  { %v51_v26 = vmul.f32 31.0, %v182_v25  ;;  %vm55_vm2 = vweird.f32 %v182_v25 }
   0xa   :  { %v33_v7 = vsub.f32 1.0, %v32_v6 }
   0xb   :  { %29 = vadd.xlane.f32.xlu0 %v28_v3  ;;  %v52_v27 = vsub.f32 1.0, %v51_v26 }
   0xc   :  { %v34_v8 = vmul.f32 %v180_v5, %v33_v7  ;;  %v177_v7 = vld [vmem:[%s270_s2] ss:$0 sm:$0xff] }
   0xd   :  { %v53_v28 = vmul.f32 %v182_v25, %v52_v27 }
   0xe   :  { %v35_v9 = vadd.f32 %v180_v5, %v34_v8 }
   0xf   :  { %v54_v29 = vadd.f32 %v182_v25, %v53_v28 }
  0x10   :  { %v37_v10 = vsel %vm36_vm1, %v180_v5, %v35_v9 }
  0x11   :  { %v56_v32 = vsel %vm55_vm2, %v182_v25, %v54_v29 }
  0x76   :  { %v27_v11 = vpop.xlane.xlu0 %26 }
  0x77   :  { %v38_v13 = vmul.f32 %v37_v10, %v27_v11 }
  0x79   :  { %v40_v14 = vsub.f32 %v20_v0, %v38_v13 }
  0x7b   :  { %v234_v15 = vmul.f32 %v176_v12, %v40_v14  ;;  %v42_v16 = vmul.f32 %v40_v14, %v40_v14 }
  0x7d   :  { %v44_v17 = vsel %vm24_vm0, %v42_v16, 0.0 }
  0x7e   :  { %45 = vadd.xlane.f32.xlu1 %v44_v17  ;;  %v30_v18 = vpop.xlane.xlu0 %29 }
  0x7f   :  { %v39_v19 = vmul.f32 %v37_v10, %v30_v18 }
  0x81   :  { %v41_v20 = vsub.f32 %v21_v2, %v39_v19 }
  0x83   :  { %v237_v21 = vmul.f32 %v176_v12, %v41_v20  ;;  %v43_v22 = vmul.f32 %v41_v20, %v41_v20 }
  0x85   :  { %v47_v23 = vsel %vm24_vm0, %v43_v22, 0.0 }
  0x86   :  { %48 = vadd.xlane.f32.xlu1 %v47_v23 }
  0xf1   :  { %v46_v34 = vpop.xlane.xlu1 %45 }
  0xf2   :  { %v57_v36 = vmul.f32 %v56_v32, %v46_v34 }
  0xf4   :  { %183 = vrsqrt.f32 %v57_v36  ;;  %vm66_vm3 = vcmp.eq.f32.partialorder %v57_v36, inf  ;;  %v69_v49 = vand.u32 2147483648, %v57_v36  ;;  %vm68_vm4 = vcmp.eq.f32.partialorder %v57_v36, 0.0 }
  0xf9   :  { %v49_v37 = vpop.xlane.xlu1 %48 }
  0xfa   :  { %v184_v38 = vpop.eup %183  ;;  %v58_v39 = vmul.f32 %v56_v32, %v49_v37 }
  0xfb   :  { %v60_v40 = vmul.f32 %v184_v38, %v57_v36 }
  0xfc   :  { %185 = vrsqrt.f32 %v58_v39  ;;  %vm78_vm5 = vcmp.eq.f32.partialorder %v58_v39, inf  ;;  %v81_v57 = vand.u32 2147483648, %v58_v39  ;;  %vm80_vm6 = vcmp.eq.f32.partialorder %v58_v39, 0.0 }
  0xfd   :  { %v61_v41 = vmul.f32 %v184_v38, %v60_v40 }
  0xff   :  { %v62_v42 = vmul.f32 0.5, %v61_v41 }
 0x101   :  { %v63_v43 = vsub.f32 1.5, %v62_v42 }
 0x102   :  { %v186_v44 = vpop.eup %185 }
 0x103   :  { %v64_v45 = vmul.f32 %v184_v38, %v63_v43  ;;  %v72_v46 = vmul.f32 %v186_v44, %v58_v39 }
 0x105   :  { %v65_v47 = vmul.f32 %v64_v45, %v57_v36  ;;  %v73_v48 = vmul.f32 %v186_v44, %v72_v46 }
 0x107   :  { %v74_v50 = vmul.f32 0.5, %v73_v48  ;;  %v67_v51 = vsel %vm66_vm3, %v57_v36, %v65_v47 }
 0x108   :  { %v70_v52 = vsel %vm68_vm4, %v69_v49, %v67_v51 }
 0x109   :  { %v75_v53 = vsub.f32 1.5, %v74_v50  ;;  %v88_v54 = vadd.f32 1e-07, %v70_v52 }
 0x10b   :  { %v76_v55 = vmul.f32 %v186_v44, %v75_v53  ;;  %187 = vrcp.f32 %v88_v54  ;;  %v101_v0 = vand.u32 2147483648, %v88_v54  ;;  %v99_v2 = vand.u32 2147483647, %v88_v54 }
 0x10c   :  { %vm95_vm8 = vweird.f32 %v88_v54 }
 0x10d   :  { %v77_v56 = vmul.f32 %v76_v55, %v58_v39  ;;  %v102_v5 = vor.u32 1.1754944e-38, %v101_v0  ;;  %vm100_vm10 = vcmp.eq.f32.partialorder %v99_v2, 8.507059e+37 }
 0x10f   :  { %v79_v58 = vsel %vm78_vm5, %v58_v39, %v77_v56 }
 0x110   :  { %v82_v59 = vsel %vm80_vm6, %v81_v57, %v79_v58 }
 0x111   :  { %v188_v60 = vpop.eup %187  ;;  %v89_v61 = vadd.f32 1e-07, %v82_v59 }
 0x112   :  { %v91_v62 = vmul.f32 %v188_v60, %v88_v54  ;;  %vm96_vm7 = vweird.f32 %v188_v60 }
 0x113   :  { %189 = vrcp.f32 %v89_v61  ;;  %vm97_vm9 = vmor %vm95_vm8, %vm96_vm7  ;;  %v116_v12 = vand.u32 2147483648, %v89_v61  ;;  %v114_v16 = vand.u32 2147483647, %v89_v61  ;;  %vm110_vm12 = vweird.f32 %v89_v61 }
 0x114   :  { %v92_v63 = vsub.f32 1.0, %v91_v62 }
 0x115   :  { %v117_v18 = vor.u32 1.1754944e-38, %v116_v12  ;;  %vm115_vm14 = vcmp.eq.f32.partialorder %v114_v16, 8.507059e+37 }
 0x116   :  { %v93_v1 = vmul.f32 %v188_v60, %v92_v63 }
 0x118   :  { %v94_v3 = vadd.f32 %v188_v60, %v93_v1 }
 0x119   :  { %v190_v4 = vpop.eup %189 }
 0x11a   :  { %v98_v6 = vsel %vm97_vm9, %v188_v60, %v94_v3  ;;  %v106_v8 = vmul.f32 %v190_v4, %v89_v61  ;;  %vm111_vm11 = vweird.f32 %v190_v4 }
 0x11b   :  { %v103_v9 = vsel %vm100_vm10, %v102_v5, %v98_v6  ;;  %vm112_vm13 = vmor %vm110_vm12, %vm111_vm11 }
 0x11c   :  { %v104_v10 = vmul.f32 %v103_v9, %v234_v15  ;;  %v107_v11 = vsub.f32 1.0, %v106_v8  ;;  %v178_v15 = vld [vmem:[%s271_s4] ss:$0 sm:$0xff] }
 0x11e   :  { %v123_v13 = vadd.f32 %v177_v7, %v104_v10  ;;  %v108_v14 = vmul.f32 %v190_v4, %v107_v11 }
 0x120   :  { %168 = vmatmul.msk.f32.vlgmr.msra.gmra.mxu0 %vm24_vm0, %v123_v13  ;;  %v109_v17 = vadd.f32 %v190_v4, %v108_v14 }
 0x122   :  { %v113_v19 = vsel %vm112_vm13, %v190_v4, %v109_v17 }
 0x123   :  { %v118_v20 = vsel %vm115_vm14, %v117_v18, %v113_v19 }
 0x124   :  { %v119_v22 = vmul.f32 %v118_v20, %v237_v21 }
 0x126   :  { %v124_v23 = vadd.f32 %v177_v7, %v119_v22 }
 0x128   :  { %169 = vmatmul.msk.f32.vlgmr.msra.gmra.mxu1 %vm24_vm0, %v124_v23 }
 0x19d   :  { %v156_v24 = vpop.f32.mrf.mxu0 }
 0x19e   :  { %v157_v25 = vadd.f32 %v178_v15, %v156_v24 }
 0x1a0   :  { %162 = vst [vmem:[%s273_s5] sm:$0xff] %v157_v25 }
 0x1a5   :  { %v159_v26 = vpop.f32.mrf.mxu1 }
 0x1a6   :  { %v160_v27 = vadd.f32 %v178_v15, %v159_v26 }
 0x1a8   :  { %163 = vst [vmem:[%s273_s5 + $0x8] sm:$0xff] %v160_v27 }

// kernel: punc_transformer_fwd.49
= control target key start
LH: loop header
LB: loop body
LE: loop exit
PB: predicated region body
PF: predicated region fallthrough
CT: control target
= control target key end

     0   :  { %vm49_vm0 = vcmask 261120   ;;  %v313_v17 = vmov 32.0   ;;  %v314_v34 = vmov 31.0   ;;  %vm269_vm15 = vcmask 523264   ;;  %s496_s2 = inlined_call_operand.vmem [shape: f32[32,32], index: 2, kind: input, shape index: {}]   ;;  %s497_s3 = inlined_call_operand.vmem [shape: f32[1,32], index: 3, kind: input, shape index: {}]   ;;  %s498_s0 = inlined_call_operand.vmem [shape: f32[16,32], index: 0, kind: input, shape index: {}]   ;;  %s499_s4 = inlined_call_operand.vmem [shape: f32[1,32], index: 4, kind: input, shape index: {}]   ;;  %s500_s1 = inlined_call_operand.vmem [shape: f32[16,32], index: 1, kind: input, shape index: {}]   ;;  %s501_s11 = inlined_call_operand.vmem [shape: f32[16,32], index: 11, kind: output, shape index: {0}]   ;;  %s502_s5 = inlined_call_operand.vmem [shape: f32[1,32], index: 5, kind: input, shape index: {}]   ;;  %s503_s7 = inlined_call_operand.vmem [shape: f32[1,32], index: 7, kind: input, shape index: {}]   ;;  %s504_s9 = inlined_call_operand.vmem [shape: f32[32,64], index: 9, kind: input, shape index: {}]   ;;  %s505_s6 = inlined_call_operand.vmem [shape: f32[32,32], index: 6, kind: input, shape index: {}]   ;;  %s506_s8 = inlined_call_operand.vmem [shape: f32[16,32], index: 8, kind: input, shape index: {}]   ;;  %s507_s10 = inlined_call_operand.vmem [shape: f32[1,64], index: 10, kind: input, shape index: {}]   ;;  %s508_s13 = inlined_call_operand.vmem [shape: f32[16,64], index: 13, kind: output, shape index: {2}]   ;;  %s509_s12 = inlined_call_operand.vmem [shape: f32[16,32], index: 12, kind: output, shape index: {1}]  }
   0x1   :  { %v48_v0 = vld [vmem:[%s496_s2 + $0x18] sm:$0xff]  ;;  %v47_v1 = vld [vmem:[%s496_s2 + $0x10] sm:$0xff]  ;;  %v46_v2 = vld [vmem:[%s496_s2 + $0x8] sm:$0xff]  ;;  %301 = vrcp.f32 %v313_v17 }
   0x2   :  { %68 = vmatpush.msra.mxu0 %v48_v0  ;;  %290 = vmatpush.msra.mxu3 %v48_v0  ;;  %v45_v3 = vld [vmem:[%s496_s2] sm:$0xff]  ;;  %v44_v5 = vld [vmem:[%s498_s0 + $0x8] sm:$0xff]  ;;  %303 = vrcp.f32 %v314_v34  ;;  %v235_v40 = vld [vmem:[%s504_s9 + $0x18] sm:$0xff] }
   0x3   :  { %v43_v4 = vld [vmem:[%s498_s0] sm:$0xff]  ;;  %v42_v11 = vld [vmem:[%s500_s1 + $0x8] sm:$0xff]  ;;  %v234_v41 = vld [vmem:[%s504_s9 + $0x10] sm:$0xff]  ;;  %258 = vmatpush.msra.mxu2 %v235_v40 }
   0x4   :  { %69 = vmatpush.msra.mxu0 %v47_v1  ;;  %291 = vmatpush.msra.mxu3 %v47_v1  ;;  %v41_v6 = vld [vmem:[%s500_s1] sm:$0xff]  ;;  %v194_v42 = vld [vmem:[%s505_s6 + $0x18] sm:$0xff]  ;;  %v233_v44 = vld [vmem:[%s504_s9 + $0x8] sm:$0xff] }
   0x5   :  { %v296_v7 = vld [vmem:[%s497_s3] ss:$0 sm:$0xff]  ;;  %217 = vmatpush.msra.mxu1 %v194_v42  ;;  %v193_v45 = vld [vmem:[%s505_s6 + $0x10] sm:$0xff]  ;;  %259 = vmatpush.msra.mxu2 %v234_v41  ;;  %v192_v46 = vld [vmem:[%s505_s6 + $0x8] sm:$0xff] }
   0x6   :  { %70 = vmatpush.msra.mxu0 %v46_v2  ;;  %292 = vmatpush.msra.mxu3 %v46_v2  ;;  %v232_v48 = vld [vmem:[%s504_s9] sm:$0xff]  ;;  %v231_v58 = vld [vmem:[%s506_s8 + $0x8] sm:$0xff] }
   0x7   :  { %v302_v18 = vpop.eup %301  ;;  %218 = vmatpush.msra.mxu1 %v193_v45  ;;  %260 = vmatpush.msra.mxu2 %v233_v44  ;;  %v230_v50 = vld [vmem:[%s506_s8] sm:$0xff] }
   0x8   :  { %71 = vmatpush.msra.mxu0 %v45_v3  ;;  %293 = vmatpush.msra.mxu3 %v45_v3  ;;  %v98_v19 = vmul.f32 32.0, %v302_v18  ;;  %vm102_vm1 = vweird.f32 %v302_v18  ;;  %v304_v35 = vpop.eup %303  ;;  %v191_v51 = vld [vmem:[%s505_s6] sm:$0xff] }
   0x9   :  { %284 = vmatmul.msk.f32.vlgmr.msra.gmra.mxu0 %vm49_vm0, %v43_v4  ;;  %285 = vmatmul.msk.f32.vlgmr.msra.gmra.mxu3 %vm49_vm0, %v44_v5  ;;  %v117_v36 = vmul.f32 31.0, %v304_v35  ;;  %vm121_vm2 = vweird.f32 %v304_v35  ;;  %v297_v17 = vld [vmem:[%s499_s4] ss:$0 sm:$0xff] }
   0xa   :  { %v99_v20 = vsub.f32 1.0, %v98_v19  ;;  %219 = vmatpush.msra.mxu1 %v192_v46  ;;  %261 = vmatpush.msra.mxu2 %v232_v48  ;;  %v300_v42 = vld [vmem:[%s507_s10] ss:$0 sm:$0xff] }
   0xb   :  { %v118_v37 = vsub.f32 1.0, %v117_v36  ;;  %288 = vmatmul.msk.f32.vlgmr.msra.gmra.mxu2 %vm49_vm0, %v230_v50  ;;  %v299_v46 = vld [vmem:[%s503_s7] ss:$0 sm:$0xff] }
   0xc   :  { %v100_v21 = vmul.f32 %v302_v18, %v99_v20  ;;  %220 = vmatpush.msra.mxu1 %v191_v51 }
   0xd   :  { %v119_v38 = vmul.f32 %v304_v35, %v118_v37 }
   0xe   :  { %v101_v22 = vadd.f32 %v302_v18, %v100_v21 }
   0xf   :  { %v120_v39 = vadd.f32 %v304_v35, %v119_v38 }
  0x10   :  { %v103_v23 = vsel %vm102_vm1, %v302_v18, %v101_v22 }
  0x11   :  { %v122_v43 = vsel %vm121_vm2, %v304_v35, %v120_v39 }
  0x13   :  { %289 = vmatmul.msk.f32.gmra.mxu2 %vm49_vm0, %v231_v58 }
  0x86   :  { %v73_v8 = vpop.f32.mrf.mxu0 }
  0x87   :  { %v79_v9 = vadd.f32 %v73_v8, %v41_v6 }
  0x89   :  { %v85_v10 = vadd.f32 %v296_v7, %v79_v9 }
  0x8b   :  { %87 = vst.msk [vmem:[%s501_s11] sm:$0xff] %vm49_vm0, %v85_v10  ;;  %v91_v12 = vsel %vm49_vm0, %v85_v10, 0.0 }
  0x8c   :  { %92 = vadd.xlane.f32.xlu0 %v91_v12  ;;  %v76_v13 = vpop.f32.mrf.mxu3 }
  0x8d   :  { %v80_v14 = vadd.f32 %v76_v13, %v42_v11 }
  0x8f   :  { %v86_v15 = vadd.f32 %v296_v7, %v80_v14 }
  0x91   :  { %88 = vst.msk [vmem:[%s501_s11 + $0x8] sm:$0xff] %vm49_vm0, %v86_v15  ;;  %v94_v16 = vsel %vm49_vm0, %v86_v15, 0.0 }
  0x94   :  { %95 = vadd.xlane.f32.xlu0 %v94_v16 }
  0xff   :  { %v93_v24 = vpop.xlane.xlu0 %92 }
 0x100   :  { %v104_v25 = vmul.f32 %v103_v23, %v93_v24 }
 0x102   :  { %v424_v26 = vsub.f32 %v85_v10, %v104_v25  ;;  %v298_v25 = vld [vmem:[%s502_s5] ss:$0 sm:$0xff] }
 0x104   :  { %v108_v27 = vmul.f32 %v424_v26, %v424_v26 }
 0x106   :  { %v110_v28 = vsel %vm49_vm0, %v108_v27, 0.0 }
 0x107   :  { %111 = vadd.xlane.f32.xlu1 %v110_v28  ;;  %v96_v29 = vpop.xlane.xlu0 %95 }
 0x108   :  { %v105_v30 = vmul.f32 %v103_v23, %v96_v29  ;;  %v152_v23 = vmul.f32 %v297_v17, %v424_v26 }
 0x10a   :  { %v429_v31 = vsub.f32 %v86_v15, %v105_v30 }
 0x10c   :  { %v109_v32 = vmul.f32 %v429_v31, %v429_v31  ;;  %v153_v37 = vmul.f32 %v297_v17, %v429_v31 }
 0x10e   :  { %v113_v33 = vsel %vm49_vm0, %v109_v32, 0.0 }
 0x10f   :  { %114 = vadd.xlane.f32.xlu1 %v113_v33 }
 0x17a   :  { %v112_v47 = vpop.xlane.xlu1 %111 }
 0x17b   :  { %v123_v49 = vmul.f32 %v122_v43, %v112_v47 }
 0x17d   :  { %305 = vrsqrt.f32 %v123_v49  ;;  %vm132_vm3 = vcmp.eq.f32.partialorder %v123_v49, inf  ;;  %v135_v1 = vand.u32 2147483648, %v123_v49  ;;  %vm134_vm4 = vcmp.eq.f32.partialorder %v123_v49, 0.0 }
 0x182   :  { %v115_v52 = vpop.xlane.xlu1 %114 }
 0x183   :  { %v306_v53 = vpop.eup %305  ;;  %v124_v54 = vmul.f32 %v122_v43, %v115_v52  ;;  %v263_v43 = vpop.f32.mrf.mxu2 }
 0x184   :  { %v126_v55 = vmul.f32 %v306_v53, %v123_v49  ;;  %v264_v44 = vadd.f32 %v300_v42, %v263_v43 }
 0x185   :  { %307 = vrsqrt.f32 %v124_v54  ;;  %vm144_vm5 = vcmp.eq.f32.partialorder %v124_v54, inf  ;;  %v147_v9 = vand.u32 2147483648, %v124_v54  ;;  %vm146_vm6 = vcmp.eq.f32.partialorder %v124_v54, 0.0 }
 0x186   :  { %v127_v56 = vmul.f32 %v306_v53, %v126_v55  ;;  %270 = vst.msk [vmem:[%s508_s13] sm:$0xff] %vm269_vm15, %v264_v44 }
 0x188   :  { %v128_v57 = vmul.f32 0.5, %v127_v56 }
 0x18a   :  { %v129_v59 = vsub.f32 1.5, %v128_v57 }
 0x18b   :  { %v308_v60 = vpop.eup %307  ;;  %v266_v45 = vpop.f32.mrf.mxu2 }
 0x18c   :  { %v130_v61 = vmul.f32 %v306_v53, %v129_v59  ;;  %v138_v62 = vmul.f32 %v308_v60, %v124_v54  ;;  %v267_v31 = vadd.f32 %v300_v42, %v266_v45 }
 0x18e   :  { %v131_v63 = vmul.f32 %v130_v61, %v123_v49  ;;  %v139_v0 = vmul.f32 %v308_v60, %v138_v62  ;;  %271 = vst.msk [vmem:[%s508_s13 + $0x8] sm:$0xff] %vm269_vm15, %v267_v31 }
 0x190   :  { %v140_v2 = vmul.f32 0.5, %v139_v0  ;;  %v133_v3 = vsel %vm132_vm3, %v123_v49, %v131_v63 }
 0x191   :  { %v136_v4 = vsel %vm134_vm4, %v135_v1, %v133_v3 }
 0x192   :  { %v141_v5 = vsub.f32 1.5, %v140_v2  ;;  %v154_v6 = vadd.f32 1e-07, %v136_v4 }
 0x194   :  { %v142_v7 = vmul.f32 %v308_v60, %v141_v5  ;;  %309 = vrcp.f32 %v154_v6  ;;  %v167_v16 = vand.u32 2147483648, %v154_v6  ;;  %v165_v19 = vand.u32 2147483647, %v154_v6 }
 0x195   :  { %vm161_vm8 = vweird.f32 %v154_v6 }
 0x196   :  { %v143_v8 = vmul.f32 %v142_v7, %v124_v54  ;;  %v168_v22 = vor.u32 1.1754944e-38, %v167_v16  ;;  %vm166_vm10 = vcmp.eq.f32.partialorder %v165_v19, 8.507059e+37 }
 0x198   :  { %v145_v10 = vsel %vm144_vm5, %v124_v54, %v143_v8 }
 0x199   :  { %v148_v11 = vsel %vm146_vm6, %v147_v9, %v145_v10 }
 0x19a   :  { %v310_v12 = vpop.eup %309  ;;  %v155_v13 = vadd.f32 1e-07, %v148_v11 }
 0x19b   :  { %v157_v14 = vmul.f32 %v310_v12, %v154_v6  ;;  %vm162_vm7 = vweird.f32 %v310_v12 }
 0x19c   :  { %311 = vrcp.f32 %v155_v13  ;;  %vm163_vm9 = vmor %vm161_vm8, %vm162_vm7  ;;  %v182_v32 = vand.u32 2147483648, %v155_v13  ;;  %v180_v35 = vand.u32 2147483647, %v155_v13  ;;  %vm176_vm12 = vweird.f32 %v155_v13 }
 0x19d   :  { %v158_v15 = vsub.f32 1.0, %v157_v14 }
 0x19e   :  { %v183_v26 = vor.u32 1.1754944e-38, %v182_v32  ;;  %vm181_vm14 = vcmp.eq.f32.partialorder %v180_v35, 8.507059e+37 }
 0x19f   :  { %v159_v18 = vmul.f32 %v310_v12, %v158_v15 }
 0x1a1   :  { %v160_v20 = vadd.f32 %v310_v12, %v159_v18 }
 0x1a2   :  { %v312_v21 = vpop.eup %311 }
 0x1a3   :  { %v164_v24 = vsel %vm163_vm9, %v310_v12, %v160_v20  ;;  %v172_v27 = vmul.f32 %v312_v21, %v155_v13  ;;  %vm177_vm11 = vweird.f32 %v312_v21 }
 0x1a4   :  { %v169_v28 = vsel %vm166_vm10, %v168_v22, %v164_v24  ;;  %vm178_vm13 = vmor %vm176_vm12, %vm177_vm11 }
 0x1a5   :  { %v170_v29 = vmul.f32 %v169_v28, %v152_v23  ;;  %v173_v30 = vsub.f32 1.0, %v172_v27 }
 0x1a7   :  { %v189_v33 = vadd.f32 %v298_v25, %v170_v29  ;;  %v174_v34 = vmul.f32 %v312_v21, %v173_v30 }
 0x1a9   :  { %286 = vmatmul.msk.f32.vlgmr.msra.gmra.mxu1 %vm49_vm0, %v189_v33  ;;  %v175_v36 = vadd.f32 %v312_v21, %v174_v34 }
 0x1ab   :  { %v179_v38 = vsel %vm178_vm13, %v312_v21, %v175_v36 }
 0x1ac   :  { %v184_v39 = vsel %vm181_vm14, %v183_v26, %v179_v38 }
 0x1ad   :  { %v185_v40 = vmul.f32 %v184_v39, %v153_v37 }
 0x1af   :  { %v190_v41 = vadd.f32 %v298_v25, %v185_v40 }
 0x1b1   :  { %287 = vmatmul.msk.f32.gmra.mxu1 %vm49_vm0, %v190_v41 }
 0x226   :  { %v222_v47 = vpop.f32.mrf.mxu1 }
 0x227   :  { %v223_v48 = vadd.f32 %v299_v46, %v222_v47 }
 0x229   :  { %228 = vst.msk [vmem:[%s509_s12] sm:$0xff] %vm49_vm0, %v223_v48 }
 0x22e   :  { %v225_v49 = vpop.f32.mrf.mxu1 }
 0x22f   :  { %v226_v50 = vadd.f32 %v299_v46, %v225_v49 }
 0x231   :  { %229 = vst.msk [vmem:[%s509_s12 + $0x8] sm:$0xff] %vm49_vm0, %v226_v50 }

</bundles_post_ra>
